<compile_context>
chip_gen: v7x
topology: tpu7x:2x2x1
jax: 0.10.0
libtpu: 0.0.40
codegen_flags: <defaults>
</compile_context>

<pallas_src>
import functools
import math

import jax
import jax.numpy as jnp
from jax.experimental import pallas as pl
from jax.experimental.pallas import tpu as pltpu


def _round_up(x, m):
    return ((x + m - 1) // m) * m


# ---------------------------------------------------------------------------
# Kernel
# ---------------------------------------------------------------------------
def _gnn_kernel(a_in_ref, a_out_ref, h_ref,
                wh_ref, bh_ref, wih_ref, bih_ref,
                out_ref, *, BB, L, E_pad, step, compute_dtype, use_vpu_adj):
    # Per grid step:
    #   a_in_ref / a_out_ref : (BB, L, L)          adjacency halves (compute_dtype)
    #   h_ref                : (BB*L, E_pad)       hidden rows (compute_dtype ingress)
    #   wh_ref               : (E_pad, 5*E_pad)    [edge_in | edge_out | hh_r | hh_i | hh_n]
    #   bh_ref               : (1, 5*E_pad)        f32 fused bias
    #   wih_ref              : (2*E_pad, 3*E_pad)  stacked [w_ih(input_in); w_ih(input_out)]
    #   bih_ref              : (1, 3*E_pad)        f32 (b_ih with b_iah/b_ioh folded in)
    #   out_ref              : (BB*L, E_pad)       lane-dense output slab
    rows = BB * L
    G3 = 3 * E_pad
    G5 = 5 * E_pad

    wh = wh_ref[...]
    wih = wih_ref[...]
    # Hoisted bias broadcasts (JAX does not CSE broadcast_in_dim inside the step loop).
    bh_b = jnp.broadcast_to(bh_ref[...], (rows, G5))
    bih_b = jnp.broadcast_to(bih_ref[...], (rows, G3))

    if use_vpu_adj:
        # VPU MAC path works in f32 (gate math is f32 anyway; no MXU involvement).
        a_in = a_in_ref[...].astype(jnp.float32)
        a_out = a_out_ref[...].astype(jnp.float32)
    else:
        a_in = a_in_ref[...].astype(compute_dtype)
        a_out = a_out_ref[...].astype(compute_dtype)

    h = h_ref[...].astype(jnp.float32)

    def adj_aggregate(a, eh):
        # agg[b, i, :] = sum_j a[b, i, j] * eh[b, j, :]
        if use_vpu_adj:
            # For small L a batched (L x L)@(L x E_pad) matmul is <1% MXU utilization
            # (M=K=L) and push/pop latency bound; do it as L broadcast-FMAs on the VPU
            # instead, freeing the MXU for the wh / wih passes.
            acc = a[:, :, 0:1] * eh[:, 0:1, :]
            for j in range(1, L):
                acc = acc + a[:, :, j:j + 1] * eh[:, j:j + 1, :]
            return acc
        return jnp.einsum('bij,bje->bie', a, eh.astype(compute_dtype),
                          preferred_element_type=jnp.float32)

    def cell(h):
        hc = h.astype(compute_dtype)
        # Single fused MXU pass over h: [eh_in | eh_out | gh].
        fused = jnp.dot(hc, wh, preferred_element_type=jnp.float32) + bh_b
        eh_in = fused[:, :E_pad].reshape(BB, L, E_pad)
        eh_out = fused[:, E_pad:2 * E_pad].reshape(BB, L, E_pad)
        gh = fused[:, 2 * E_pad:]                                    # (rows, 3*E_pad), f32

        agg_in = adj_aggregate(a_in, eh_in).reshape(rows, E_pad)
        agg_out = adj_aggregate(a_out, eh_out).reshape(rows, E_pad)
        # Lane-dense concat of two 128-aligned blocks (essentially free) -> one
        # K = 2*E_pad matmul that fills the 256-deep MXU on v6e/v7x.
        aio = jnp.concatenate([agg_in, agg_out], axis=-1).astype(compute_dtype)
        gi = jnp.dot(aio, wih, preferred_element_type=jnp.float32) + bih_b

        # Gate math: every slice is a whole-vreg (128-lane aligned) block, f32 on VPU/EUP.
        gates_ri = jax.nn.sigmoid(gi[:, :2 * E_pad] + gh[:, :2 * E_pad])
        reset_gate = gates_ri[:, :E_pad]
        input_gate = gates_ri[:, E_pad:]
        new_gate = jnp.tanh(gi[:, 2 * E_pad:] + reset_gate * gh[:, 2 * E_pad:])
        return h + input_gate * (new_gate - h)

    # Multi-step propagation stays inside the kernel (hidden resident in VMEM).
    # Short step counts: unroll for LLO scheduler visibility; longer: fori_loop to
    # bound code size / vreg live ranges.
    if step <= 2:
        for _ in range(step):
            h = cell(h)
    else:
        h = jax.lax.fori_loop(0, step, lambda _, hh: cell(hh), h)

    out_ref[...] = h.astype(out_ref.dtype)


# ---------------------------------------------------------------------------
# Parameter preparation (fuse + zero-pad the PyTorch-layout parameters)
# ---------------------------------------------------------------------------
def prepare_gnn_params(params, embedding_size, compute_dtype=jnp.bfloat16):
    """params = (w_in, b_in, w_out, b_out, w_ih, b_ih, w_hh, b_hh, b_iah, b_ioh)
    with the exact PyTorch module shapes.  Returns fused, lane-padded kernel params."""
    (w_in, b_in, w_out, b_out, w_ih, b_ih, w_hh, b_hh, b_iah, b_ioh) = [
        jnp.asarray(p, jnp.float32) for p in params]
    E = embedding_size
    E_pad = _round_up(E, 128)

    # Fused h-consuming weight: columns [edge_in | edge_out | hh_r | hh_i | hh_n].
    wh = jnp.zeros((E_pad, 5 * E_pad), jnp.float32)
    bh = jnp.zeros((1, 5 * E_pad), jnp.float32)
    wh = wh.at[:E, 0:E].set(w_in.T)
    wh = wh.at[:E, E_pad:E_pad + E].set(w_out.T)
    bh = bh.at[0, 0:E].set(b_in)
    bh = bh.at[0, E_pad:E_pad + E].set(b_out)
    w_hh_t = w_hh.T                      # (E, 3E)
    for g in range(3):
        wh = wh.at[:E, (2 + g) * E_pad:(2 + g) * E_pad + E].set(
            w_hh_t[:, g * E:(g + 1) * E])
        bh = bh.at[0, (2 + g) * E_pad:(2 + g) * E_pad + E].set(
            b_hh[g * E:(g + 1) * E])

    # w_ih split into input_in / input_out halves and *vertically stacked* so that
    # gi = [agg_in | agg_out] @ wih is a single K = 2*E_pad MXU pass.
    w_ih_t = w_ih.T                      # (2E, 3E)
    wih = jnp.zeros((2 * E_pad, 3 * E_pad), jnp.float32)
    bih = jnp.zeros((1, 3 * E_pad), jnp.float32)
    # b_iah / b_ioh only ever feed gi through w_ih -> fold them into an effective b_ih.
    b_ih_eff = b_ih + b_iah @ w_ih_t[:E] + b_ioh @ w_ih_t[E:]
    for g in range(3):
        wih = wih.at[:E, g * E_pad:g * E_pad + E].set(w_ih_t[:E, g * E:(g + 1) * E])
        wih = wih.at[E_pad:E_pad + E, g * E_pad:g * E_pad + E].set(
            w_ih_t[E:, g * E:(g + 1) * E])
        bih = bih.at[0, g * E_pad:g * E_pad + E].set(b_ih_eff[g * E:(g + 1) * E])

    return (wh.astype(compute_dtype), bh, wih.astype(compute_dtype), bih, E_pad)


# ---------------------------------------------------------------------------
# Generation-aware blocking / VMEM budget
# ---------------------------------------------------------------------------
def _pick_vmem_limit():
    """~48 MiB on v7x (64 MiB physical), ~96 MiB on v5e/v6e (128 MiB physical)."""
    cap = 64 * 1024 * 1024
    try:
        cap = int(pltpu.get_tpu_info().vmem_capacity_bytes)
    except Exception:
        pass
    return min(cap * 3 // 4, 100 * 1024 * 1024)


def _pick_blocking(B, L_pad, E_pad, block_batch, vmem_limit, compute_dtype):
    itemsize = jnp.dtype(compute_dtype).itemsize
    # Crude per-row VMEM footprint (bytes): f32 intermediates (fused 5E + gi 3E +
    # agg/concat + gates + state ~ 18E) plus double-buffered block I/O.
    per_row = (18 * E_pad * 4
               + 2 * E_pad * itemsize        # hidden block (double buffered)
               + 2 * E_pad * 4               # output block (double buffered)
               + 2 * 2 * L_pad * itemsize)   # adjacency blocks (double buffered)
    budget = vmem_limit // 2                 # headroom for weights + compiler scratch
    max_rows = max(L_pad, budget // per_row)
    bb = max(1, min(block_batch, max_rows // L_pad, B))
    num_blocks = pl.cdiv(B, bb)
    if B > 1:
        # >= 2 blocks (DMA/compute overlap) and an even count so the "parallel"
        # batch axis shards across both TensorCores on v7x megacore.
        num_blocks = max(2, num_blocks)
        if num_blocks % 2:
            num_blocks += 1
        bb = pl.cdiv(B, num_blocks)
    return bb, num_blocks


# ---------------------------------------------------------------------------
# Wrapper
# ---------------------------------------------------------------------------
def gnn_forward(A, hidden, params, step=1, *, block_batch=128, use_bf16=True):
    B, L, E = hidden.shape
    assert A.shape == (B, L, 2 * L)
    compute_dtype = jnp.bfloat16 if use_bf16 else jnp.float32
    itemsize = jnp.dtype(compute_dtype).itemsize

    wh, bh, wih, bih, E_pad = prepare_gnn_params(params, E, compute_dtype)

    L_pad = _round_up(L, 8)
    vmem_limit = _pick_vmem_limit()
    BB, num_blocks = _pick_blocking(B, L_pad, E_pad, block_batch, vmem_limit,
                                    compute_dtype)
    B_pad = BB * num_blocks
    rows = BB * L_pad

    # Hidden: fold pad + bf16 cast + flatten into one pass; skip padding when aligned.
    # (Zero-padded weight rows/cols keep padded embedding lanes exactly zero; padded
    #  session rows / batch entries never leak into real rows because their adjacency
    #  columns are zero, and they are sliced off at the end.)
    if (B_pad, L_pad, E_pad) == (B, L, E):
        h_flat = hidden.astype(compute_dtype).reshape(B * L, E)
    else:
        h_flat = (jnp.zeros((B_pad, L_pad, E_pad), compute_dtype)
                  .at[:B, :L, :E].set(hidden.astype(compute_dtype))
                  .reshape(B_pad * L_pad, E_pad))

    if (B_pad, L_pad) == (B, L):
        a_in = A[:, :, :L].astype(compute_dtype)
        a_out = A[:, :, L:2 * L].astype(compute_dtype)
    else:
        a_in = (jnp.zeros((B_pad, L_pad, L_pad), compute_dtype)
                .at[:B, :L, :L].set(A[:, :, :L].astype(compute_dtype)))
        a_out = (jnp.zeros((B_pad, L_pad, L_pad), compute_dtype)
                 .at[:B, :L, :L].set(A[:, :, L:2 * L].astype(compute_dtype)))

    use_vpu_adj = L_pad <= 16

    kernel = functools.partial(
        _gnn_kernel, BB=BB, L=L_pad, E_pad=E_pad, step=step,
        compute_dtype=compute_dtype, use_vpu_adj=use_vpu_adj)

    def const_spec(shape):
        return pl.BlockSpec(shape, lambda b: (0,) * len(shape))

    # Advisory cost estimate so XLA can overlap surrounding pad/cast/slice glue.
    flops = step * num_blocks * (
        2 * rows * E_pad * 5 * E_pad            # fused h matmul
        + 2 * rows * 2 * E_pad * 3 * E_pad      # gi matmul
        + 2 * 2 * BB * L_pad * L_pad * E_pad)   # adjacency aggregation
    transcendentals = step * num_blocks * 3 * rows * E_pad
    bytes_accessed = ((a_in.size + a_out.size + h_flat.size) * itemsize
                      + B_pad * L_pad * E_pad * jnp.dtype(hidden.dtype).itemsize
                      + (wh.size + wih.size) * itemsize
                      + (bh.size + bih.size) * 4)

    out_flat = pl.pallas_call(
        kernel,
        out_shape=jax.ShapeDtypeStruct((B_pad * L_pad, E_pad), hidden.dtype),
        grid_spec=pltpu.PrefetchScalarGridSpec(
            num_scalar_prefetch=0,
            grid=(num_blocks,),
            in_specs=[
                pl.BlockSpec((BB, L_pad, L_pad), lambda b: (b, 0, 0)),   # A_in
                pl.BlockSpec((BB, L_pad, L_pad), lambda b: (b, 0, 0)),   # A_out
                pl.BlockSpec((rows, E_pad), lambda b: (b, 0)),           # hidden (flattened)
                # Weights/biases use constant index maps (DMA'd once, not per block).
                const_spec(wh.shape), const_spec(bh.shape),
                const_spec(wih.shape), const_spec(bih.shape),
            ],
            out_specs=pl.BlockSpec((rows, E_pad), lambda b: (b, 0)),     # lane-dense out
        ),
        compiler_params=pltpu.CompilerParams(
            dimension_semantics=("parallel",),
            vmem_limit_bytes=int(vmem_limit)),
        cost_estimate=pl.CostEstimate(flops=int(flops),
                                      transcendentals=int(transcendentals),
                                      bytes_accessed=int(bytes_accessed)),
    )(a_in, a_out, h_flat, wh, bh, wih, bih)

    out = out_flat.reshape(B_pad, L_pad, E_pad)[:B, :L, :E]
    return out.astype(hidden.dtype)


# ---------------------------------------------------------------------------
# Parameter init (PyTorch module shapes) + pure-JAX reference
# ---------------------------------------------------------------------------
def init_gnn_params(key, embedding_size):
    E = embedding_size
    stdv = 1.0 / math.sqrt(E)
    keys = jax.random.split(key, 10)

    def u(k, shape):
        return jax.random.uniform(k, shape, jnp.float32, -stdv, stdv)

    w_ih = u(keys[0], (3 * E, 2 * E))
    w_hh = u(keys[1], (3 * E, E))
    b_ih = u(keys[2], (3 * E,))
    b_hh = u(keys[3], (3 * E,))
    b_iah = u(keys[4], (E,))
    b_ioh = u(keys[5], (E,))
    w_in = u(keys[6], (E, E))
    b_in = u(keys[7], (E,))
    w_out = u(keys[8], (E, E))
    b_out = u(keys[9], (E,))
    return (w_in, b_in, w_out, b_out, w_ih, b_ih, w_hh, b_hh, b_iah, b_ioh)


def gnn_forward_ref(A, hidden, params, step=1):
    """Pure-JAX f32 reference mirroring the PyTorch module exactly."""
    (w_in, b_in, w_out, b_out, w_ih, b_ih, w_hh, b_hh, b_iah, b_ioh) = [
        jnp.asarray(p, jnp.float32) for p in params]
    B, L, E = hidden.shape
    h = hidden.astype(jnp.float32)
    A = A.astype(jnp.float32)
    for _ in range(step):
        eh_in = h @ w_in.T + b_in
        eh_out = h @ w_out.T + b_out
        input_in = jnp.einsum('bij,bje->bie', A[:, :, :L], eh_in) + b_iah
        input_out = jnp.einsum('bij,bje->bie', A[:, :, L:2 * L], eh_out) + b_ioh
        inputs = jnp.concatenate([input_in, input_out], axis=2)
        gi = inputs @ w_ih.T + b_ih
        gh = h @ w_hh.T + b_hh
        i_r, i_i, i_n = gi[..., :E], gi[..., E:2 * E], gi[..., 2 * E:]
        h_r, h_i, h_n = gh[..., :E], gh[..., E:2 * E], gh[..., 2 * E:]
        reset_gate = jax.nn.sigmoid(i_r + h_r)
        input_gate = jax.nn.sigmoid(i_i + h_i)
        new_gate = jnp.tanh(i_n + reset_gate * h_n)
        h = (1.0 - input_gate) * h + input_gate * new_gate
    return h


if __name__ == "__main__":
    B, L, E = 8, 8, 32     # batch, max_session_len, embedding_size

    key = jax.random.PRNGKey(0)
    k_a, k_h, k_p = jax.random.split(key, 3)

    A = jax.random.uniform(k_a, (B, L, 2 * L), jnp.float32)
    hidden = jax.random.normal(k_h, (B, L, E), jnp.float32)
    params = init_gnn_params(k_p, E)

    # f32 MXU operands, step=1 (module default): tight semantic check.
    out1 = jax.block_until_ready(gnn_forward(A, hidden, params, step=1, use_bf16=False))
    ref1 = gnn_forward_ref(A, hidden, params, step=1)
    assert out1.shape == (B, L, E)
    assert jnp.allclose(out1, ref1, atol=1e-4, rtol=1e-4), "f32 step=1 mismatch"

    # step=3: exercises the in-kernel lax.fori_loop multi-step propagation path.
    out3 = jax.block_until_ready(gnn_forward(A, hidden, params, step=3, use_bf16=False))
    ref3 = gnn_forward_ref(A, hidden, params, step=3)
    assert jnp.allclose(out3, ref3, atol=1e-4, rtol=1e-4), "f32 step=3 mismatch"

    # Ragged shapes (L not a multiple of 8, odd-ish batch) + multi-step: exercises the
    # padded-row / padded-batch path and proves padding never leaks into real rows.
    B2, L2 = 6, 7
    A2 = jax.random.uniform(k_a, (B2, L2, 2 * L2), jnp.float32)
    h2 = jax.random.normal(k_h, (B2, L2, E), jnp.float32)
    out_r = jax.block_until_ready(gnn_forward(A2, h2, params, step=2, use_bf16=False))
    ref_r = gnn_forward_ref(A2, h2, params, step=2)
    assert jnp.allclose(out_r, ref_r, atol=1e-4, rtol=1e-4), "ragged f32 step=2 mismatch"

    # Default path: bf16 MXU operands (recommended on v5e/v6e/v7x), f32 gate math.
    out_bf16 = jax.block_until_ready(gnn_forward(A, hidden, params, step=1))
    assert jnp.allclose(out_bf16, ref1, atol=5e-2, rtol=5e-2), "bf16 step=1 mismatch"

    print("KERNEL_OK")
</pallas_src>

<mosaic_0001>
module attributes {stable_mosaic.version = 11 : i64} {
  func.func @_gnn_kernel(%arg0: i32, %arg1: memref<4x8x8xf32, #tpu.memory_space<vmem>>, %arg2: memref<4x8x8xf32, #tpu.memory_space<vmem>>, %arg3: memref<32x128xf32, #tpu.memory_space<vmem>>, %arg4: memref<128x640xf32, #tpu.memory_space<vmem>>, %arg5: memref<1x640xf32, #tpu.memory_space<vmem>>, %arg6: memref<256x384xf32, #tpu.memory_space<vmem>>, %arg7: memref<1x384xf32, #tpu.memory_space<vmem>>, %arg8: memref<32x128xf32, #tpu.memory_space<vmem>>) attributes {dimension_semantics = [#tpu.dimension_semantics<parallel>], iteration_bounds = array<i64: 2>, scalar_prefetch = 0 : i64, scratch_operands = 0 : i64, tpu.core_type = #tpu.core_type<tc>, window_params = [{transform_indices = @transform_0, window_bounds = array<i64: 4, 8, 8>}, {transform_indices = @transform_1, window_bounds = array<i64: 4, 8, 8>}, {transform_indices = @transform_2, window_bounds = array<i64: 32, 128>}, {pipeline_mode = #tpu.pipeline_mode<synchronous>, transform_indices = @transform_3, window_bounds = array<i64: 128, 640>}, {pipeline_mode = #tpu.pipeline_mode<synchronous>, transform_indices = @transform_4, window_bounds = array<i64: 1, 640>}, {pipeline_mode = #tpu.pipeline_mode<synchronous>, transform_indices = @transform_5, window_bounds = array<i64: 256, 384>}, {pipeline_mode = #tpu.pipeline_mode<synchronous>, transform_indices = @transform_6, window_bounds = array<i64: 1, 384>}, {transform_indices = @transform_7, window_bounds = array<i64: 32, 128>}]} {
    %c0 = arith.constant 0 : index
    %c0_0 = arith.constant 0 : index
    %0 = vector.load %arg4[%c0, %c0_0] : memref<128x640xf32, #tpu.memory_space<vmem>>, vector<128x640xf32>
    %c0_1 = arith.constant 0 : index
    %c0_2 = arith.constant 0 : index
    %1 = vector.load %arg6[%c0_1, %c0_2] : memref<256x384xf32, #tpu.memory_space<vmem>>, vector<256x384xf32>
    %c0_3 = arith.constant 0 : index
    %c0_4 = arith.constant 0 : index
    %2 = vector.load %arg5[%c0_3, %c0_4] : memref<1x640xf32, #tpu.memory_space<vmem>>, vector<1x640xf32>
    %3 = vector.shape_cast %2 : vector<1x640xf32> to vector<1x640xf32>
    %4 = vector.broadcast %3 : vector<1x640xf32> to vector<32x640xf32>
    %c0_5 = arith.constant 0 : index
    %c0_6 = arith.constant 0 : index
    %5 = vector.load %arg7[%c0_5, %c0_6] : memref<1x384xf32, #tpu.memory_space<vmem>>, vector<1x384xf32>
    %6 = vector.shape_cast %5 : vector<1x384xf32> to vector<1x384xf32>
    %7 = vector.broadcast %6 : vector<1x384xf32> to vector<32x384xf32>
    %c0_7 = arith.constant 0 : index
    %c0_8 = arith.constant 0 : index
    %c0_9 = arith.constant 0 : index
    %8 = vector.load %arg1[%c0_7, %c0_8, %c0_9] : memref<4x8x8xf32, #tpu.memory_space<vmem>>, vector<4x8x8xf32>
    %c0_10 = arith.constant 0 : index
    %c0_11 = arith.constant 0 : index
    %c0_12 = arith.constant 0 : index
    %9 = vector.load %arg2[%c0_10, %c0_11, %c0_12] : memref<4x8x8xf32, #tpu.memory_space<vmem>>, vector<4x8x8xf32>
    %c0_13 = arith.constant 0 : index
    %c0_14 = arith.constant 0 : index
    %10 = vector.load %arg3[%c0_13, %c0_14] : memref<32x128xf32, #tpu.memory_space<vmem>>, vector<32x128xf32>
    %cst = arith.constant dense<0.000000e+00> : vector<32x640xf32>
    %11 = tpu.matmul %10, %0, %cst {dimension_numbers = #tpu.dot_dimension_numbers<[1], [0], [0], [1], [0, 0, 1, 1], [], []>} : vector<32x128xf32>, vector<128x640xf32>, vector<32x640xf32> -> vector<32x640xf32>
    %12 = arith.addf %11, %4 : vector<32x640xf32>
    %13 = vector.extract_strided_slice %12 {offsets = [0, 0], sizes = [32, 128], strides = [1, 1]} : vector<32x640xf32> to vector<32x128xf32>
    %14 = vector.shape_cast %13 : vector<32x128xf32> to vector<4x8x128xf32>
    %15 = vector.extract_strided_slice %12 {offsets = [0, 128], sizes = [32, 128], strides = [1, 1]} : vector<32x640xf32> to vector<32x128xf32>
    %16 = vector.shape_cast %15 : vector<32x128xf32> to vector<4x8x128xf32>
    %17 = vector.extract_strided_slice %12 {offsets = [0, 256], sizes = [32, 384], strides = [1, 1]} : vector<32x640xf32> to vector<32x384xf32>
    %18 = vector.extract_strided_slice %8 {offsets = [0, 0, 0], sizes = [4, 8, 1], strides = [1, 1, 1]} : vector<4x8x8xf32> to vector<4x8x1xf32>
    %19 = vector.extract_strided_slice %14 {offsets = [0, 0, 0], sizes = [4, 1, 128], strides = [1, 1, 1]} : vector<4x8x128xf32> to vector<4x1x128xf32>
    %20 = vector.broadcast %18 : vector<4x8x1xf32> to vector<4x8x128xf32>
    %21 = vector.broadcast %19 : vector<4x1x128xf32> to vector<4x8x128xf32>
    %22 = arith.mulf %20, %21 : vector<4x8x128xf32>
    %23 = vector.extract_strided_slice %8 {offsets = [0, 0, 1], sizes = [4, 8, 1], strides = [1, 1, 1]} : vector<4x8x8xf32> to vector<4x8x1xf32>
    %24 = vector.extract_strided_slice %14 {offsets = [0, 1, 0], sizes = [4, 1, 128], strides = [1, 1, 1]} : vector<4x8x128xf32> to vector<4x1x128xf32>
    %25 = vector.broadcast %23 : vector<4x8x1xf32> to vector<4x8x128xf32>
    %26 = vector.broadcast %24 : vector<4x1x128xf32> to vector<4x8x128xf32>
    %27 = arith.mulf %25, %26 : vector<4x8x128xf32>
    %28 = arith.addf %22, %27 : vector<4x8x128xf32>
    %29 = vector.extract_strided_slice %8 {offsets = [0, 0, 2], sizes = [4, 8, 1], strides = [1, 1, 1]} : vector<4x8x8xf32> to vector<4x8x1xf32>
    %30 = vector.extract_strided_slice %14 {offsets = [0, 2, 0], sizes = [4, 1, 128], strides = [1, 1, 1]} : vector<4x8x128xf32> to vector<4x1x128xf32>
    %31 = vector.broadcast %29 : vector<4x8x1xf32> to vector<4x8x128xf32>
    %32 = vector.broadcast %30 : vector<4x1x128xf32> to vector<4x8x128xf32>
    %33 = arith.mulf %31, %32 : vector<4x8x128xf32>
    %34 = arith.addf %28, %33 : vector<4x8x128xf32>
    %35 = vector.extract_strided_slice %8 {offsets = [0, 0, 3], sizes = [4, 8, 1], strides = [1, 1, 1]} : vector<4x8x8xf32> to vector<4x8x1xf32>
    %36 = vector.extract_strided_slice %14 {offsets = [0, 3, 0], sizes = [4, 1, 128], strides = [1, 1, 1]} : vector<4x8x128xf32> to vector<4x1x128xf32>
    %37 = vector.broadcast %35 : vector<4x8x1xf32> to vector<4x8x128xf32>
    %38 = vector.broadcast %36 : vector<4x1x128xf32> to vector<4x8x128xf32>
    %39 = arith.mulf %37, %38 : vector<4x8x128xf32>
    %40 = arith.addf %34, %39 : vector<4x8x128xf32>
    %41 = vector.extract_strided_slice %8 {offsets = [0, 0, 4], sizes = [4, 8, 1], strides = [1, 1, 1]} : vector<4x8x8xf32> to vector<4x8x1xf32>
    %42 = vector.extract_strided_slice %14 {offsets = [0, 4, 0], sizes = [4, 1, 128], strides = [1, 1, 1]} : vector<4x8x128xf32> to vector<4x1x128xf32>
    %43 = vector.broadcast %41 : vector<4x8x1xf32> to vector<4x8x128xf32>
    %44 = vector.broadcast %42 : vector<4x1x128xf32> to vector<4x8x128xf32>
    %45 = arith.mulf %43, %44 : vector<4x8x128xf32>
    %46 = arith.addf %40, %45 : vector<4x8x128xf32>
    %47 = vector.extract_strided_slice %8 {offsets = [0, 0, 5], sizes = [4, 8, 1], strides = [1, 1, 1]} : vector<4x8x8xf32> to vector<4x8x1xf32>
    %48 = vector.extract_strided_slice %14 {offsets = [0, 5, 0], sizes = [4, 1, 128], strides = [1, 1, 1]} : vector<4x8x128xf32> to vector<4x1x128xf32>
    %49 = vector.broadcast %47 : vector<4x8x1xf32> to vector<4x8x128xf32>
    %50 = vector.broadcast %48 : vector<4x1x128xf32> to vector<4x8x128xf32>
    %51 = arith.mulf %49, %50 : vector<4x8x128xf32>
    %52 = arith.addf %46, %51 : vector<4x8x128xf32>
    %53 = vector.extract_strided_slice %8 {offsets = [0, 0, 6], sizes = [4, 8, 1], strides = [1, 1, 1]} : vector<4x8x8xf32> to vector<4x8x1xf32>
    %54 = vector.extract_strided_slice %14 {offsets = [0, 6, 0], sizes = [4, 1, 128], strides = [1, 1, 1]} : vector<4x8x128xf32> to vector<4x1x128xf32>
    %55 = vector.broadcast %53 : vector<4x8x1xf32> to vector<4x8x128xf32>
    %56 = vector.broadcast %54 : vector<4x1x128xf32> to vector<4x8x128xf32>
    %57 = arith.mulf %55, %56 : vector<4x8x128xf32>
    %58 = arith.addf %52, %57 : vector<4x8x128xf32>
    %59 = vector.extract_strided_slice %8 {offsets = [0, 0, 7], sizes = [4, 8, 1], strides = [1, 1, 1]} : vector<4x8x8xf32> to vector<4x8x1xf32>
    %60 = vector.extract_strided_slice %14 {offsets = [0, 7, 0], sizes = [4, 1, 128], strides = [1, 1, 1]} : vector<4x8x128xf32> to vector<4x1x128xf32>
    %61 = vector.broadcast %59 : vector<4x8x1xf32> to vector<4x8x128xf32>
    %62 = vector.broadcast %60 : vector<4x1x128xf32> to vector<4x8x128xf32>
    %63 = arith.mulf %61, %62 : vector<4x8x128xf32>
    %64 = arith.addf %58, %63 : vector<4x8x128xf32>
    %65 = vector.shape_cast %64 : vector<4x8x128xf32> to vector<32x128xf32>
    %66 = vector.extract_strided_slice %9 {offsets = [0, 0, 0], sizes = [4, 8, 1], strides = [1, 1, 1]} : vector<4x8x8xf32> to vector<4x8x1xf32>
    %67 = vector.extract_strided_slice %16 {offsets = [0, 0, 0], sizes = [4, 1, 128], strides = [1, 1, 1]} : vector<4x8x128xf32> to vector<4x1x128xf32>
    %68 = vector.broadcast %66 : vector<4x8x1xf32> to vector<4x8x128xf32>
    %69 = vector.broadcast %67 : vector<4x1x128xf32> to vector<4x8x128xf32>
    %70 = arith.mulf %68, %69 : vector<4x8x128xf32>
    %71 = vector.extract_strided_slice %9 {offsets = [0, 0, 1], sizes = [4, 8, 1], strides = [1, 1, 1]} : vector<4x8x8xf32> to vector<4x8x1xf32>
    %72 = vector.extract_strided_slice %16 {offsets = [0, 1, 0], sizes = [4, 1, 128], strides = [1, 1, 1]} : vector<4x8x128xf32> to vector<4x1x128xf32>
    %73 = vector.broadcast %71 : vector<4x8x1xf32> to vector<4x8x128xf32>
    %74 = vector.broadcast %72 : vector<4x1x128xf32> to vector<4x8x128xf32>
    %75 = arith.mulf %73, %74 : vector<4x8x128xf32>
    %76 = arith.addf %70, %75 : vector<4x8x128xf32>
    %77 = vector.extract_strided_slice %9 {offsets = [0, 0, 2], sizes = [4, 8, 1], strides = [1, 1, 1]} : vector<4x8x8xf32> to vector<4x8x1xf32>
    %78 = vector.extract_strided_slice %16 {offsets = [0, 2, 0], sizes = [4, 1, 128], strides = [1, 1, 1]} : vector<4x8x128xf32> to vector<4x1x128xf32>
    %79 = vector.broadcast %77 : vector<4x8x1xf32> to vector<4x8x128xf32>
    %80 = vector.broadcast %78 : vector<4x1x128xf32> to vector<4x8x128xf32>
    %81 = arith.mulf %79, %80 : vector<4x8x128xf32>
    %82 = arith.addf %76, %81 : vector<4x8x128xf32>
    %83 = vector.extract_strided_slice %9 {offsets = [0, 0, 3], sizes = [4, 8, 1], strides = [1, 1, 1]} : vector<4x8x8xf32> to vector<4x8x1xf32>
    %84 = vector.extract_strided_slice %16 {offsets = [0, 3, 0], sizes = [4, 1, 128], strides = [1, 1, 1]} : vector<4x8x128xf32> to vector<4x1x128xf32>
    %85 = vector.broadcast %83 : vector<4x8x1xf32> to vector<4x8x128xf32>
    %86 = vector.broadcast %84 : vector<4x1x128xf32> to vector<4x8x128xf32>
    %87 = arith.mulf %85, %86 : vector<4x8x128xf32>
    %88 = arith.addf %82, %87 : vector<4x8x128xf32>
    %89 = vector.extract_strided_slice %9 {offsets = [0, 0, 4], sizes = [4, 8, 1], strides = [1, 1, 1]} : vector<4x8x8xf32> to vector<4x8x1xf32>
    %90 = vector.extract_strided_slice %16 {offsets = [0, 4, 0], sizes = [4, 1, 128], strides = [1, 1, 1]} : vector<4x8x128xf32> to vector<4x1x128xf32>
    %91 = vector.broadcast %89 : vector<4x8x1xf32> to vector<4x8x128xf32>
    %92 = vector.broadcast %90 : vector<4x1x128xf32> to vector<4x8x128xf32>
    %93 = arith.mulf %91, %92 : vector<4x8x128xf32>
    %94 = arith.addf %88, %93 : vector<4x8x128xf32>
    %95 = vector.extract_strided_slice %9 {offsets = [0, 0, 5], sizes = [4, 8, 1], strides = [1, 1, 1]} : vector<4x8x8xf32> to vector<4x8x1xf32>
    %96 = vector.extract_strided_slice %16 {offsets = [0, 5, 0], sizes = [4, 1, 128], strides = [1, 1, 1]} : vector<4x8x128xf32> to vector<4x1x128xf32>
    %97 = vector.broadcast %95 : vector<4x8x1xf32> to vector<4x8x128xf32>
    %98 = vector.broadcast %96 : vector<4x1x128xf32> to vector<4x8x128xf32>
    %99 = arith.mulf %97, %98 : vector<4x8x128xf32>
    %100 = arith.addf %94, %99 : vector<4x8x128xf32>
    %101 = vector.extract_strided_slice %9 {offsets = [0, 0, 6], sizes = [4, 8, 1], strides = [1, 1, 1]} : vector<4x8x8xf32> to vector<4x8x1xf32>
    %102 = vector.extract_strided_slice %16 {offsets = [0, 6, 0], sizes = [4, 1, 128], strides = [1, 1, 1]} : vector<4x8x128xf32> to vector<4x1x128xf32>
    %103 = vector.broadcast %101 : vector<4x8x1xf32> to vector<4x8x128xf32>
    %104 = vector.broadcast %102 : vector<4x1x128xf32> to vector<4x8x128xf32>
    %105 = arith.mulf %103, %104 : vector<4x8x128xf32>
    %106 = arith.addf %100, %105 : vector<4x8x128xf32>
    %107 = vector.extract_strided_slice %9 {offsets = [0, 0, 7], sizes = [4, 8, 1], strides = [1, 1, 1]} : vector<4x8x8xf32> to vector<4x8x1xf32>
    %108 = vector.extract_strided_slice %16 {offsets = [0, 7, 0], sizes = [4, 1, 128], strides = [1, 1, 1]} : vector<4x8x128xf32> to vector<4x1x128xf32>
    %109 = vector.broadcast %107 : vector<4x8x1xf32> to vector<4x8x128xf32>
    %110 = vector.broadcast %108 : vector<4x1x128xf32> to vector<4x8x128xf32>
    %111 = arith.mulf %109, %110 : vector<4x8x128xf32>
    %112 = arith.addf %106, %111 : vector<4x8x128xf32>
    %113 = vector.shape_cast %112 : vector<4x8x128xf32> to vector<32x128xf32>
    %114 = tpu.concatenate %65, %113 in 1 : vector<32x128xf32>, vector<32x128xf32> -> vector<32x256xf32>
    %cst_15 = arith.constant dense<0.000000e+00> : vector<32x384xf32>
    %115 = tpu.matmul %114, %1, %cst_15 {dimension_numbers = #tpu.dot_dimension_numbers<[1], [0], [0], [1], [0, 0, 1, 1], [], []>} : vector<32x256xf32>, vector<256x384xf32>, vector<32x384xf32> -> vector<32x384xf32>
    %116 = arith.addf %115, %7 : vector<32x384xf32>
    %117 = vector.extract_strided_slice %116 {offsets = [0, 0], sizes = [32, 256], strides = [1, 1]} : vector<32x384xf32> to vector<32x256xf32>
    %118 = vector.extract_strided_slice %17 {offsets = [0, 0], sizes = [32, 256], strides = [1, 1]} : vector<32x384xf32> to vector<32x256xf32>
    %119 = arith.addf %117, %118 : vector<32x256xf32>
    %120 = arith.negf %119 : vector<32x256xf32>
    %121 = math.exp %120 : vector<32x256xf32>
    %cst_16 = arith.constant 1.000000e+00 : f32
    %122 = vector.broadcast %cst_16 : f32 to vector<32x256xf32>
    %123 = arith.addf %122, %121 : vector<32x256xf32>
    %124 = arith.divf %122, %123 : vector<32x256xf32>
    %125 = vector.extract_strided_slice %124 {offsets = [0, 0], sizes = [32, 128], strides = [1, 1]} : vector<32x256xf32> to vector<32x128xf32>
    %126 = vector.extract_strided_slice %124 {offsets = [0, 128], sizes = [32, 128], strides = [1, 1]} : vector<32x256xf32> to vector<32x128xf32>
    %127 = vector.extract_strided_slice %116 {offsets = [0, 256], sizes = [32, 128], strides = [1, 1]} : vector<32x384xf32> to vector<32x128xf32>
    %128 = vector.extract_strided_slice %17 {offsets = [0, 256], sizes = [32, 128], strides = [1, 1]} : vector<32x384xf32> to vector<32x128xf32>
    %129 = arith.mulf %125, %128 : vector<32x128xf32>
    %130 = arith.addf %127, %129 : vector<32x128xf32>
    %131 = math.tanh %130 : vector<32x128xf32>
    %132 = arith.subf %131, %10 : vector<32x128xf32>
    %133 = arith.mulf %126, %132 : vector<32x128xf32>
    %134 = arith.addf %10, %133 : vector<32x128xf32>
    %c0_17 = arith.constant 0 : index
    %c0_18 = arith.constant 0 : index
    %135 = vector.load %arg8[%c0_17, %c0_18] : memref<32x128xf32, #tpu.memory_space<vmem>>, vector<32x128xf32>
    tpu.vector_store %arg8[%c0_17, %c0_18], %134 {strides = array<i32>} : memref<32x128xf32, #tpu.memory_space<vmem>>, vector<32x128xf32>,
    return
  }
  func.func @transform_0(%arg0: i32) -> (i32, i32, i32) {
    %c0_i32 = arith.constant 0 : i32
    %c0_i32_0 = arith.constant 0 : i32
    %c0_i32_1 = arith.constant 0 : i32
    return %arg0, %c0_i32, %c0_i32_0 : i32, i32, i32
  }
  func.func @transform_1(%arg0: i32) -> (i32, i32, i32) {
    %c0_i32 = arith.constant 0 : i32
    %c0_i32_0 = arith.constant 0 : i32
    %c0_i32_1 = arith.constant 0 : i32
    return %arg0, %c0_i32, %c0_i32_0 : i32, i32, i32
  }
  func.func @transform_2(%arg0: i32) -> (i32, i32) {
    %c0_i32 = arith.constant 0 : i32
    %c0_i32_0 = arith.constant 0 : i32
    return %arg0, %c0_i32 : i32, i32
  }
  func.func @transform_3(%arg0: i32) -> (i32, i32) {
    %c0_i32 = arith.constant 0 : i32
    %c0_i32_0 = arith.constant 0 : i32
    %c0_i32_1 = arith.constant 0 : i32
    return %c0_i32, %c0_i32_0 : i32, i32
  }
  func.func @transform_4(%arg0: i32) -> (i32, i32) {
    %c0_i32 = arith.constant 0 : i32
    %c0_i32_0 = arith.constant 0 : i32
    %c0_i32_1 = arith.constant 0 : i32
    return %c0_i32, %c0_i32_0 : i32, i32
  }
  func.func @transform_5(%arg0: i32) -> (i32, i32) {
    %c0_i32 = arith.constant 0 : i32
    %c0_i32_0 = arith.constant 0 : i32
    %c0_i32_1 = arith.constant 0 : i32
    return %c0_i32, %c0_i32_0 : i32, i32
  }
  func.func @transform_6(%arg0: i32) -> (i32, i32) {
    %c0_i32 = arith.constant 0 : i32
    %c0_i32_0 = arith.constant 0 : i32
    %c0_i32_1 = arith.constant 0 : i32
    return %c0_i32, %c0_i32_0 : i32, i32
  }
  func.func @transform_7(%arg0: i32) -> (i32, i32) {
    %c0_i32 = arith.constant 0 : i32
    %c0_i32_0 = arith.constant 0 : i32
    return %arg0, %c0_i32 : i32, i32
  }
}

</mosaic_0001>

<bundles_post_ra>
// kernel: tpu_custom_call.1
= control target key start
LH: loop header
LB: loop body
LE: loop exit
PB: predicated region body
PF: predicated region fallthrough
CT: control target
= control target key end

     0   :  { %s3688_s0 = inlined_call_operand.hbm [shape: f32[8,8,8], index: 0, kind: input, shape index: {}]   ;;  %s3689_s1 = inlined_call_operand.hbm [shape: f32[8,8,8], index: 1, kind: input, shape index: {}]   ;;  %s3690_s2 = inlined_call_operand.hbm [shape: f32[64,128], index: 2, kind: input, shape index: {}]   ;;  %s3691_s3 = inlined_call_operand.hbm [shape: f32[128,640], index: 3, kind: input, shape index: {}]   ;;  %s3692_s4 = inlined_call_operand.vmem [shape: f32[1,640], index: 4, kind: input, shape index: {}]   ;;  %s3693_s5 = inlined_call_operand.hbm [shape: f32[256,384], index: 5, kind: input, shape index: {}]   ;;  %s3694_s6 = inlined_call_operand.vmem [shape: f32[1,384], index: 6, kind: input, shape index: {}]   ;;  %s3695_s7 = inlined_call_operand.hbm [shape: f32[64,128], index: 7, kind: output, shape index: {}]  }
   0x1   :  { %3721 = sst [smem:[#allocation44_spill]] %s3689_s1 }
   0x2   :  { %3722 = sst [smem:[#allocation45_spill]] %s3691_s3 }
   0x3   :  { %12 = vsyncpa [#allocation3], 0 }
   0x4   :  { %14 = vsyncpa [#allocation3 + $0x1], 0 }
   0x5   :  { %15 = vsyncpa [#allocation6], 0 }
   0x6   :  { %17 = vsyncpa [#allocation6 + $0x1], 0 }
   0x7   :  { %18 = vsyncpa [#allocation9], 0 }
   0x8   :  { %19 = vsyncpa [#allocation4], 0 }
   0x9   :  { %21 = vsyncpa [#allocation4 + $0x1], 0  ;;  %s2775_s24 = smov 0   ;;  %s2777_s25 = smov 0  }
   0xa   :  { %s2779_s26 = smov 0   ;;  %s2781_s27 = smov 0  }
   0xb LB: > { %3723 = sst [smem:[#allocation16_spill]] %s2698_s24  ;;  %s2796_s28 = sadd.s32 4294967295, %s2710_s27   ;;  %s2710_s27 = sphi %s2781_s27, %s3811_s27   ;;  %s2706_s26 = sphi %s2779_s26, %s3815_s26   ;;  %s2702_s25 = sphi %s2777_s25, %s3814_s25   ;;  %s2698_s24 = sphi %s2775_s24, %s3813_s24  }
   0xc   : > { %3724 = sst [smem:[#allocation17_spill]] %s2710_s27  ;;  %s1949_s29 = sadd.s32 4294967294, %s2710_s27  }
   0xd   : > { %s2800_s30 = sadd.s32 1, %s2710_s27   ;;  %s34_s8 = sadd.s32 1, %s2706_s26 }
   0xe   : > { %3725 = sst [smem:[#allocation18_spill]] %s2800_s30  ;;  %s31_s9 = ssub.s32 %s2710_s27, %s2800_s30 }
   0xf   : > { %p41_p0 = scmp.ne.s32.totalorder %s2706_s26, %s2702_s25  ;;  %p32_p1 = scmp.eq.s32.totalorder %s31_s9, 0 }
  0x10   : > { %p42_p2 = scmp.eq.s32.totalorder %s2710_s27, 0  ;;  %p47_p3 = scmp.ne.s32.totalorder %s2702_s25, %s2698_s24 }
  0x11   : > { %p3697_p4 = scmp.eq.s32.totalorder %s2796_s28, 0  ;;  %p207_p7 = scmp.eq.s32.totalorder %s2796_s28, 1 }
  0x12   : > { %s2812_s10 = scalar_select %p32_p1, %s2706_s26, %s34_s8  }
  0x13   : > { %p2814_p5 = por %p42_p2, %p41_p0  ;;  %p2820_p6 = por %p3697_p4, %p47_p3 }
  0x14   : > { %3726 = sst [smem:[#allocation19_spill]] %s2812_s10  ;;  %p213_p8 = scmp.eq.s32.totalorder %s1949_s29, 1 }
  0x15   : > { %s3727_s11 = scalar_select %p2814_p5, 1, 0 }
  0x16   : > { %s3728_s12 = scalar_select %p2820_p6, 1, 0 }
  0x17   : > { %p1950_p9 = scmp.ge.s32.totalorder %s2710_s27, 1  ;;  %p220_p10 = scmp.lt.s32.totalorder %s2710_s27, 3 }
  0x18   : > { %p2827_p11 = por %p207_p7, %p41_p0  ;;  %p2831_p12 = por %p213_p8, %p47_p3 }
  0x19   : > { %p2835_p13 = pnand %p1950_p9, %p220_p10  ;;  %s2712_s16 = smov [#allocation8]  }
  0x1a   : > { %s3729_s13 = scalar_select %p2827_p11, 1, 0 }
  0x1b   : > { %s3730_s14 = scalar_select %p2831_p12, 1, 0 }
  0x1c   : > { %s3732_s15 = scalar_select %p2835_p13, 1, 0 }
  0x1d   : > { %3731 = sst [smem:[#allocation20_spill]] %s3730_s14  ;;  %p2321_p1 = pneg %p2835_p13 }
  0x1e   : > { %s232_s17 = sshll.u32 %s2712_s16, 4  ;;  %s3696_s19 = sand.u32 1, %s2706_s26   ;;  %s233_s17 = int_to_ptr.vmem [resolvable:$true] %s232_s17 }
  0x1f   : > { %p2843_p2 = pnand %p2321_p1, %p3697_p4  ;;  %s2852_s20 = sshll.u32 %s3696_s19, 5 }
  0x20   : > { %s3734_s3 = sld [smem:[#allocation45_spill]] }
  0x21   : > { %s3733_s18 = scalar_select %p2843_p2, 1, 0 }
  0x22   : > { %p3703_p8 = pneg %p2843_p2 }
  0x26   : > { %s2490_s23 = scalar_lea.hbm %s3734_s3, 10240 }
  0x27   : > { %p2491_p7 = scmp.ne.s32.totalorder %s3734_s3, %s2490_s23  ;;  %p2497_p1 = scmp.lt.u32.totalorder %s2490_s23, %s3734_s3 }
  0x29   : > { %p2493_p9 = pnand %p3703_p8, %p2491_p7 }
  0x2b   : > { %p2494_p10 = pneg %p2493_p9 }
  0x2d   : > { %p2499_p0 = pnand %p2497_p1, %p2494_p10 }
  0x2f   : > { %2502 = shalt.err (!%p2499_p0)
}
  0x30   : > { %s2503_s19 = scalar_lea.vmem %s233_s17, 10240  ;;  %p2511_p11 = scmp.lt.s32.totalorder %s233_s17, %s233_s17 }
  0x31   : > { %p2504_p4 = scmp.ne.s32.totalorder %s233_s17, %s2503_s19  ;;  %p2512_p6 = scmp.lt.s32.totalorder %s2503_s19, %s2503_s19 }
  0x33   : > { %p2506_p3 = pnand %p2504_p4, %p3703_p8  ;;  %p2513_p13 = por %p2512_p6, %p2511_p11 }
  0x35   : > { %p2507_p12 = pneg %p2506_p3 }
  0x37   : > { %p2514_p5 = pnand %p2513_p13, %p2507_p12 }
  0x39   : > { %2517 = shalt.err (!%p2514_p5)
}
  0x3a   : > { %s2713_s21 = smov 640   ;;  %s2714_s22 = smov 40  }
  0x3b   : > { %2324 = dma.hbm_to_vmem [thread:$0]  (!%p2843_p2), %s3734_s3, 10240, %s233_s17, [#allocation9], %s2713_s21, %s2713_s21, %s2714_s22  }
  0x3c   : > { %s2877_s8 = sshll.u32 %s2710_s27, 9  ;;  %p3735_p4 = scmp.ne.s32.totalorder %s3727_s11, 0 }
  0x3d   : > { %p3736_p0 = scmp.lt.s32.totalorder %s2710_s27, 2  ;;  %s286_s9 = sand.u32 1, %s2710_s27  }
  0x3e   : > { %s3738_s1 = sld [smem:[#allocation44_spill]]  ;;  %s290_s17 = scalar_lea.vmem [#allocation5], %s2852_s20 }
  0x3f   : > { %p2883_p6 = pnand %p3736_p0, %p3735_p4  ;;  %s297_s21 = sshll.u32 %s290_s17, 4  ;;  %s2895_s21 = int_to_ptr.vmem [resolvable:$true] %s297_s21 }
  0x40   : > { %s2897_s11 = scalar_lea.sflag [#allocation6], %s286_s9 }
  0x41   : > { %s3737_s19 = scalar_select %p2883_p6, 1, 0 }
  0x42   : > { %p2903_p11 = pneg %p2883_p6 }
  0x44   : > { %s2892_s30 = scalar_lea.hbm %s3738_s1, %s2877_s8  ;;  %s2523_s16 = scalar_lea.hbm %s3738_s1, 1024 }
  0x45   : > { %s2518_s22 = scalar_lea.hbm %s2892_s30, 512  ;;  %p2524_p3 = scmp.lt.u32.totalorder %s2892_s30, %s3738_s1 }
  0x46   : > { %p2519_p5 = scmp.ne.s32.totalorder %s2892_s30, %s2518_s22  ;;  %p2525_p7 = scmp.lt.u32.totalorder %s2523_s16, %s2518_s22 }
  0x47   : > { %s3739_s23 = scalar_select %p2903_p11, 1, 0 }
  0x48   : > { %p2521_p12 = pnand %p2903_p11, %p2519_p5  ;;  %p2526_p9 = por %p2525_p7, %p2524_p3 }
  0x49   : > { %p2527_p10 = scmp.lt.u32.totalorder %s2518_s22, %s2892_s30 }
  0x4a   : > { %p2522_p13 = pneg %p2521_p12 }
  0x4b   : > { %p2528_p1 = por %p2527_p10, %p2526_p9 }
  0x4d   : > { %p2529_p4 = pnand %p2528_p1, %p2522_p13 }
  0x4f   : > { %2532 = shalt.err (!%p2529_p4)
}
  0x50   : > { %s2533_s9 = scalar_lea.vmem %s2895_s21, 512  ;;  %s2715_s10 = smov [#allocation5]  }
  0x51   : > { %p2534_p0 = scmp.ne.s32.totalorder %s2895_s21, %s2533_s9  ;;  %s2538_s29 = sshll.u32 %s2715_s10, 4  ;;  %s2539_s29 = int_to_ptr.vmem [resolvable:$false] %s2538_s29 }
  0x52   : > { %s2540_s3 = scalar_lea.vmem %s2539_s29, 1024  ;;  %p2541_p8 = scmp.lt.s32.totalorder %s2895_s21, %s2539_s29 }
  0x53   : > { %p2536_p5 = pnand %p2534_p0, %p2903_p11  ;;  %p2542_p2 = scmp.lt.s32.totalorder %s2540_s3, %s2533_s9 }
  0x55   : > { %p2537_p12 = pneg %p2536_p5  ;;  %p2543_p3 = por %p2542_p2, %p2541_p8 }
  0x57   : > { %p2544_p7 = pnand %p2543_p3, %p2537_p12 }
  0x59   : > { %2547 = shalt.err (!%p2544_p7)
}
  0x5a   : > { %s3713_s22 = smov 128   ;;  %s2717_s16 = smov 8  }
  0x5b   : > { %2334 = dma.hbm_to_vmem [thread:$0]  (!%p2883_p6), %s2892_s30, 512, %s2895_s21, %s2897_s11, %s3713_s22, %s3713_s22, %s2717_s16  }
  0x5c   : > { %s2718_s17 = smov [#allocation10]   ;;  %s2548_s3 = scalar_lea.hbm %s3693_s5, 12288 }
  0x5d   : > { %s248_s10 = sshll.u32 %s2718_s17, 4  ;;  %p2549_p2 = scmp.ne.s32.totalorder %s3693_s5, %s2548_s3  ;;  %s249_s10 = int_to_ptr.vmem [resolvable:$true] %s248_s10 }
  0x5e   : > { %p3740_p8 = scmp.ne.s32.totalorder %s3733_s18, 0  ;;  %p2555_p1 = scmp.lt.u32.totalorder %s2548_s3, %s3693_s5 }
  0x60   : > { %p3741_p13 = pneg %p3740_p8 }
  0x62   : > { %p2551_p9 = pnand %p2549_p2, %p3741_p13 }
  0x64   : > { %p2552_p10 = pneg %p2551_p9 }
  0x66   : > { %p2557_p4 = pnand %p2555_p1, %p2552_p10 }
  0x68   : > { %2560 = shalt.err (!%p2557_p4)
}
  0x69   : > { %s2561_s30 = scalar_lea.vmem %s249_s10, 12288  ;;  %p3742_p5 = pmov %p3741_p13 }
  0x6a   : > { %p2562_p0 = scmp.ne.s32.totalorder %s249_s10, %s2561_s30  ;;  %p2569_p7 = scmp.lt.s32.totalorder %s249_s10, %s249_s10 }
  0x6b   : > { %p2570_p6 = scmp.lt.s32.totalorder %s2561_s30, %s2561_s30 }
  0x6c   : > { %p2564_p12 = pnand %p2562_p0, %p3742_p5 }
  0x6d   : > { %p2571_p11 = por %p2570_p6, %p2569_p7 }
  0x6e   : > { %p2565_p3 = pneg %p2564_p12 }
  0x70   : > { %p2572_p2 = pnand %p2571_p11, %p2565_p3 }
  0x72   : > { %2575 = shalt.err (!%p2572_p2)
}
  0x73   : > { %s2719_s1 = smov 384   ;;  %s2720_s24 = smov 24  }
  0x74   : > { %2327 = dma.hbm_to_vmem [thread:$0]  (!%p3740_p8), %s3693_s5, 12288, %s249_s10, [#allocation9], %s2719_s1, %s2719_s1, %s2720_s24  }
  0x75   : > { %s2954_s29 = scalar_lea.hbm %s3688_s0, %s2877_s8  ;;  %s269_s9 = scalar_lea.vmem [#allocation2], %s2852_s20 }
  0x76   : > { %s276_s3 = sshll.u32 %s269_s9, 4  ;;  %s3743_s30 = sand.u32 1, %s2706_s26   ;;  %s2957_s3 = int_to_ptr.vmem [resolvable:$true] %s276_s3 }
  0x77   : > { %s2961_s22 = scalar_lea.sflag [#allocation3], %s3743_s30  ;;  %s2576_s18 = scalar_lea.hbm %s2954_s29, 512 }
  0x78   : > { %p2577_p6 = scmp.ne.s32.totalorder %s2954_s29, %s2576_s18  ;;  %p3744_p11 = scmp.ne.s32.totalorder %s3739_s23, 0 }
  0x79   : > { %s2581_s24 = scalar_lea.hbm %s3688_s0, 1024  ;;  %p2582_p9 = scmp.lt.u32.totalorder %s2954_s29, %s3688_s0 }
  0x7a   : > { %p2579_p8 = pnand %p2577_p6, %p3744_p11  ;;  %p2583_p10 = scmp.lt.u32.totalorder %s2581_s24, %s2576_s18 }
  0x7b   : > { %p2585_p4 = scmp.lt.u32.totalorder %s2576_s18, %s2954_s29 }
  0x7c   : > { %p2580_p13 = pneg %p2579_p8  ;;  %p2584_p1 = por %p2583_p10, %p2582_p9 }
  0x7e   : > { %p2586_p0 = por %p2585_p4, %p2584_p1 }
  0x80   : > { %p2587_p5 = pnand %p2586_p0, %p2580_p13 }
  0x82   : > { %2590 = shalt.err (!%p2587_p5)
}
  0x83   : > { %s2591_s21 = scalar_lea.vmem %s2957_s3, 512  ;;  %s2721_s17 = smov [#allocation2]  }
  0x84   : > { %p2592_p12 = scmp.ne.s32.totalorder %s2957_s3, %s2591_s21  ;;  %s2596_s9 = sshll.u32 %s2721_s17, 4  ;;  %s2597_s9 = int_to_ptr.vmem [resolvable:$false] %s2596_s9 }
  0x85   : > { %s2598_s30 = scalar_lea.vmem %s2597_s9, 1024  ;;  %p2599_p2 = scmp.lt.s32.totalorder %s2957_s3, %s2597_s9 }
  0x86   : > { %p2594_p3 = pnand %p2592_p12, %p3744_p11  ;;  %p2600_p6 = scmp.lt.s32.totalorder %s2598_s30, %s2591_s21 }
  0x88   : > { %p2595_p7 = pneg %p2594_p3  ;;  %p2601_p8 = por %p2600_p6, %p2599_p2 }
  0x8a   : > { %p2602_p9 = pnand %p2601_p8, %p2595_p7 }
  0x8c   : > { %2605 = shalt.err (!%p2602_p9)
}
  0x8d   : > { %p3745_p13 = scmp.ne.s32.totalorder %s3737_s19, 0  ;;  %s3746_s18 = smov 128  }
  0x8e   : > { %s2992_s24 = scalar_lea.hbm %s3690_s2, %s2877_s8  ;;  %s311_s27 = scalar_lea.vmem [#allocation7], %s2852_s20 }
  0x8f   : > { %2331 = dma.hbm_to_vmem [thread:$0]  (!%p3745_p13), %s2954_s29, 512, %s2957_s3, %s2961_s22, %s3746_s18, %s3746_s18, %s2717_s16  }
  0x90   : > { %s318_s14 = sshll.u32 %s311_s27, 4  ;;  %s2606_s21 = scalar_lea.hbm %s2992_s24, 512  ;;  %s2995_s14 = int_to_ptr.vmem [resolvable:$true] %s318_s14 }
  0x91   : > { %p2607_p10 = scmp.ne.s32.totalorder %s2992_s24, %s2606_s21  ;;  %s2611_s29 = scalar_lea.hbm %s3690_s2, 1024 }
  0x92   : > { %p2612_p0 = scmp.lt.u32.totalorder %s2992_s24, %s3690_s2  ;;  %p2613_p5 = scmp.lt.u32.totalorder %s2611_s29, %s2606_s21 }
  0x93   : > { %p2609_p1 = pnand %p2607_p10, %p3744_p11  ;;  %p2615_p3 = scmp.lt.u32.totalorder %s2606_s21, %s2992_s24 }
  0x94   : > { %p2614_p12 = por %p2613_p5, %p2612_p0 }
  0x95   : > { %p2610_p4 = pneg %p2609_p1 }
  0x96   : > { %p2616_p7 = por %p2615_p3, %p2614_p12 }
  0x98   : > { %p2617_p2 = pnand %p2616_p7, %p2610_p4 }
  0x9a   : > { %2620 = shalt.err (!%p2617_p2)
}
  0x9b   : > { %s2621_s20 = scalar_lea.vmem %s2995_s14, 512  ;;  %s2722_s9 = smov [#allocation7]  }
  0x9c   : > { %p2622_p6 = scmp.ne.s32.totalorder %s2995_s14, %s2621_s20  ;;  %s2626_s30 = sshll.u32 %s2722_s9, 4  ;;  %s2627_s30 = int_to_ptr.vmem [resolvable:$false] %s2626_s30 }
  0x9d   : > { %s2628_s10 = scalar_lea.vmem %s2627_s30, 1024  ;;  %p2629_p10 = scmp.lt.s32.totalorder %s2995_s14, %s2627_s30 }
  0x9e   : > { %p2624_p8 = pnand %p2622_p6, %p3744_p11  ;;  %p2630_p1 = scmp.lt.s32.totalorder %s2628_s10, %s2621_s20 }
  0xa0   : > { %p2625_p9 = pneg %p2624_p8  ;;  %p2631_p0 = por %p2630_p1, %p2629_p10 }
  0xa2   : > { %p2632_p5 = pnand %p2631_p0, %p2625_p9 }
  0xa4   : > { %2635 = shalt.err (!%p2632_p5)
}
  0xa5   : > { %2337 = dma.hbm_to_vmem [thread:$0]  (!%p3745_p13), %s2992_s24, 512, %s2995_s14, %s2897_s11, %s3746_s18, %s3746_s18, %s2717_s16  }
  0xa6   : > { %p3747_p11 = scmp.ne.s32.totalorder %s3732_s15, 0 }
  0xa8   : > { %330 = sbr.rel (%p3747_p11) target bundleno = 795 (0x31b), region = 48 }
  0xaf   : > { %s3025_s23 = sand.u32 1, %s2702_s25   ;;  %p3748_p4 = scmp.ne.s32.totalorder %s3728_s12, 0 }
  0xb0   : > { %s3028_s1 = sshll.u32 %s3025_s23, 5  ;;  %s333_s19 = scalar_lea.sflag [#allocation3], %s3025_s23 }
  0xb1   : > { %s3032_s27 = scalar_lea.vmem [#allocation2], %s3028_s1 }
  0xb2   : > { %2681 = dma.done.wait (%p3748_p4), %s333_s19, 512  }
  0xb3   : > { %2683 = vsyncadd (%p3748_p4), %s333_s19, 4294966784  ;;  %s341_s15 = sand.u32 1, %s2796_s28   ;;  %s3040_s16 = scalar_lea.vmem [#allocation5], %s3028_s1 }
  0xb4   : > { %s342_s11 = scalar_lea.sflag [#allocation6], %s341_s15 }
  0xb5   : > { %2685 = dma.done.wait (%p3748_p4), %s342_s11, 1024  }
  0xb6   : > { %2687 = vsyncadd (%p3748_p4), %s342_s11, 4294966272  ;;  %s3047_s18 = scalar_lea.vmem [#allocation7], %s3028_s1  ;;  %p3749_p13 = scmp.eq.s32.totalorder %s2796_s28, 0 }
  0xb8   : > { %2689 = dma.done.wait (%p3749_p13), [#allocation9], 22528   ;;  %p3750_p12 = pmov %p3749_p13 }
  0xb9   : > { %v2723_v0 = vmov 0   ;;  %v2724_v1 = vmov 0.0   ;;  %v2725_v2 = vmov 2   ;;  %v3058_v3 = vld [vmem:[%s3032_s27] sm:$0xff]  ;;  %v408_v4 = vld [vmem:[#allocation8 + $0x8] sm:$0xff]  ;;  %v413_v5 = vld [vmem:[#allocation8 + $0x30] sm:$0xff] }
  0xba   : > { %2691 = vsyncadd (%p3750_p12), [#allocation9], 4294944768  ;;  %2399 = vset.pattern.permute.xlu1 %v2723_v0  ;;  %703 = vmatprep.mubr.f32.mxu0 %v2724_v1  ;;  %v2089_v6 = vpack.c.bf16 %v413_v5, %v408_v4  ;;  %v407_v7 = vld [vmem:[#allocation8] sm:$0xff]  ;;  %v412_v8 = vld [vmem:[#allocation8 + $0x28] sm:$0xff]  ;;  %v2726_v18 = vmov 1   ;;  %v2727_v25 = vmov 3  }
  0xbb   : > { %2402 = vset.pattern.permute.xlu0 %v2725_v2  ;;  %792 = vmatprep.mubr.f32.mxu1 %v2724_v1  ;;  %v418_v9 = vld [vmem:[#allocation8 + $0x58] sm:$0xff]  ;;  %v2091_v10 = vpack.c.bf16 %v412_v8, %v407_v7  ;;  %v423_v11 = vld [vmem:[#allocation8 + $0x80] sm:$0xff]  ;;  %v417_v12 = vld [vmem:[#allocation8 + $0x50] sm:$0xff]  ;;  %v2728_v8 = vmov 4   ;;  %s3623_s17 = scalar_lea.vmem [#allocation11], %s3028_s1  ;;  %s1986_s22 = sshll.u32 %s2796_s28, 9 }
  0xbc   : > { %904 = vperm.xlu1 %2399, %v3058_v3   ;;  %983 = vperm.xlu0 %2402, %v3058_v3   ;;  %v422_v13 = vld [vmem:[#allocation8 + $0x78] sm:$0xff]  ;;  %v2093_v14 = vpack.c.bf16 %v423_v11, %v418_v9  ;;  %v428_v15 = vld [vmem:[#allocation8 + $0xa8] sm:$0xff]  ;;  %v433_v16 = vld [vmem:[#allocation8 + $0xd0] sm:$0xff]  ;;  %v2729_v11 = vmov 7   ;;  %s1814_s29 = sshll.u32 %s3623_s17, 4  ;;  %s3641_s20 = scalar_lea.hbm %s3695_s7, %s1986_s22  ;;  %s3643_s29 = int_to_ptr.vmem [resolvable:$true] %s1814_s29 }
  0xbd   : > { %2090 = vmatprep.subr.bf16.mxu0 %v2089_v6  ;;  %v2095_v17 = vpack.c.bf16 %v422_v13, %v417_v12  ;;  %v2097_v19 = vpack.c.bf16 %v433_v16, %v428_v15  ;;  %v427_v20 = vld [vmem:[#allocation8 + $0xa0] sm:$0xff]  ;;  %v432_v21 = vld [vmem:[#allocation8 + $0xc8] sm:$0xff]  ;;  %v438_v23 = vld [vmem:[#allocation8 + $0xf8] sm:$0xff]  ;;  %s1801_s9 = scalar_lea.sflag [#allocation4], %s3025_s23  ;;  %s2636_s30 = scalar_lea.vmem %s3643_s29, 512 }
  0xbe   : > { %2092 = vmatpush1.bf16.msra.mxu0 %v2091_v10  ;;  %v3065_v22 = vld [vmem:[%s3040_s16] sm:$0xff]  ;;  %v2099_v26 = vpack.c.bf16 %v432_v21, %v427_v20  ;;  %v437_v28 = vld [vmem:[#allocation8 + $0xf0] sm:$0xff]  ;;  %v442_v29 = vld [vmem:[#allocation8 + $0x118] sm:$0xff]  ;;  %p2637_p3 = scmp.ne.s32.totalorder %s3643_s29, %s2636_s30  ;;  %p3805_p7 = scmp.ne.s32.totalorder %s3729_s13, 0 }
  0xbf   : > { %2094 = vmatprep.subr.bf16.mxu0 %v2093_v14  ;;  %v443_v24 = vld [vmem:[#allocation8 + $0x120] sm:$0xff]  ;;  %v448_v30 = vld [vmem:[#allocation8 + $0x148] sm:$0xff]  ;;  %v453_v31 = vld [vmem:[#allocation8 + $0x170] sm:$0xff]  ;;  %v2103_v32 = vpack.c.bf16 %v442_v29, %v437_v28  ;;  %s2732_s28 = smov [#allocation11]  }
  0xc0   : > { %2400 = vset.pattern.permute.xlu1 %v2726_v18  ;;  %2405 = vset.pattern.permute.xlu0 %v2727_v25  ;;  %v2101_v27 = vpack.c.bf16 %v443_v24, %v438_v23  ;;  %v3073_v33 = vld [vmem:[%s3040_s16 + $0x8] sm:$0xff]  ;;  %v2105_v34 = vpack.c.bf16 %v453_v31, %v448_v30  ;;  %v447_v35 = vld [vmem:[#allocation8 + $0x140] sm:$0xff]  ;;  %v458_v37 = vld [vmem:[#allocation8 + $0x198] sm:$0xff]  ;;  %p2638_p2 = pnand %p2637_p3, %p3805_p7  ;;  %s2640_s10 = sshll.u32 %s2732_s28, 4  ;;  %s2641_s10 = int_to_ptr.vmem [resolvable:$false] %s2640_s10 }
  0xc1   : > { %943 = vperm.xlu1 %2400, %v3058_v3   ;;  %1343 = vperm.xlu0 %2405, %v3065_v22   ;;  %v452_v36 = vld [vmem:[#allocation8 + $0x168] sm:$0xff]  ;;  %v463_v38 = vld [vmem:[#allocation8 + $0x1c0] sm:$0xff]  ;;  %v457_v42 = vld [vmem:[#allocation8 + $0x190] sm:$0xff]  ;;  %s2642_s1 = scalar_lea.vmem %s2641_s10, 1024  ;;  %p2643_p8 = scmp.lt.s32.totalorder %s3643_s29, %s2641_s10 }
  0xc2   : > { %2096 = vmatpush1.bf16.msra.mxu0 %v2095_v17  ;;  %v3076_v39 = vld [vmem:[%s3032_s27 + $0x8] sm:$0xff]  ;;  %v2107_v40 = vpack.c.bf16 %v452_v36, %v447_v35  ;;  %v2109_v41 = vpack.c.bf16 %v463_v38, %v458_v37  ;;  %v462_v43 = vld [vmem:[#allocation8 + $0x1b8] sm:$0xff]  ;;  %v473_v45 = vld [vmem:[#allocation8 + $0x210] sm:$0xff]  ;;  %p2639_p6 = pneg %p2638_p2  ;;  %p2644_p9 = scmp.lt.s32.totalorder %s2642_s1, %s2636_s30 }
  0xc3   : > { %2098 = vmatprep.subr.bf16.mxu0 %v2097_v19  ;;  %v468_v44 = vld [vmem:[#allocation8 + $0x1e8] sm:$0xff]  ;;  %v2111_v46 = vpack.c.bf16 %v462_v43, %v457_v42  ;;  %v467_v48 = vld [vmem:[#allocation8 + $0x1e0] sm:$0xff]  ;;  %v478_v50 = vld [vmem:[#allocation8 + $0x238] sm:$0xff] }
  0xc4   : > { %v2113_v47 = vpack.c.bf16 %v473_v45, %v468_v44  ;;  %v472_v49 = vld [vmem:[#allocation8 + $0x208] sm:$0xff]  ;;  %v483_v51 = vld [vmem:[#allocation8 + $0x260] sm:$0xff]  ;;  %v477_v54 = vld [vmem:[#allocation8 + $0x230] sm:$0xff]  ;;  %p2645_p10 = por %p2644_p9, %p2643_p8 }
  0xc5   : > { %2401 = vset.pattern.permute.xlu1 %v2725_v2  ;;  %1023 = vperm.xlu0 %2405, %v3058_v3   ;;  %v2115_v52 = vpack.c.bf16 %v472_v49, %v467_v48  ;;  %v2117_v53 = vpack.c.bf16 %v483_v51, %v478_v50  ;;  %v482_v55 = vld [vmem:[#allocation8 + $0x258] sm:$0xff]  ;;  %v3087_v56 = vld [vmem:[%s3040_s16 + $0x10] sm:$0xff]  ;;  %v3098_v59 = vld [vmem:[%s3047_s18] sm:$0xff]  ;;  %v2730_v50 = vmov 5  }
  0xc6   : > { %1303 = vperm.xlu1 %2401, %v3065_v22   ;;  %2100 = vmatpush1.bf16.msra.mxu0 %v2099_v26  ;;  %v3092_v57 = vld [vmem:[%s3040_s16 + $0x18] sm:$0xff]  ;;  %v2119_v58 = vpack.c.bf16 %v482_v55, %v477_v54  ;;  %v3106_v60 = vld [vmem:[%s3047_s18 + $0x8] sm:$0xff]  ;;  %v3116_v62 = vld [vmem:[%s3047_s18 + $0x10] sm:$0xff]  ;;  %p2646_p1 = pnand %p2645_p10, %p2639_p6 }
  0xc7   : > { %2102 = vmatprep.subr.bf16.mxu0 %v2101_v27  ;;  %v3110_v61 = vld [vmem:[%s3032_s27 + $0x18] sm:$0xff]  ;;  %v415_v4 = vld [vmem:[#allocation8 + $0x40] sm:$0xff]  ;;  %v409_v6 = vld [vmem:[#allocation8 + $0x10] sm:$0xff] }
  0xc8   : > { %v410_v63 = vld [vmem:[#allocation8 + $0x18] sm:$0xff]  ;;  %v420_v12 = vld [vmem:[#allocation8 + $0x68] sm:$0xff]  ;;  %v425_v13 = vld [vmem:[#allocation8 + $0x90] sm:$0xff] }
  0xc9   : > { %1027 = vperm.xlu0 %2405, %v3076_v39   ;;  %v2121_v5 = vpack.c.bf16 %v415_v4, %v410_v63  ;;  %v414_v7 = vld [vmem:[#allocation8 + $0x38] sm:$0xff]  ;;  %v2125_v14 = vpack.c.bf16 %v425_v13, %v420_v12  ;;  %v419_v15 = vld [vmem:[#allocation8 + $0x60] sm:$0xff]  ;;  %v424_v16 = vld [vmem:[#allocation8 + $0x88] sm:$0xff] }
  0xca   : > { %2403 = vset.pattern.permute.xlu1 %v2723_v0  ;;  %2104 = vmatpush1.bf16.msra.mxu0 %v2103_v32  ;;  %v3123_v9 = vld [vmem:[%s3047_s18 + $0x18] sm:$0xff]  ;;  %v2123_v10 = vpack.c.bf16 %v414_v7, %v409_v6  ;;  %v2127_v17 = vpack.c.bf16 %v424_v16, %v419_v15  ;;  %v435_v20 = vld [vmem:[#allocation8 + $0xe0] sm:$0xff]  ;;  %v429_v23 = vld [vmem:[#allocation8 + $0xb0] sm:$0xff] }
  0xcb   : > { %1229 = vperm.xlu1 %2403, %v3073_v33   ;;  %2106 = vmatprep.subr.bf16.mxu0 %v2105_v34  ;;  %v430_v19 = vld [vmem:[#allocation8 + $0xb8] sm:$0xff]  ;;  %v440_v27 = vld [vmem:[#allocation8 + $0x108] sm:$0xff]  ;;  %v445_v28 = vld [vmem:[#allocation8 + $0x130] sm:$0xff] }
  0xcc   : > { %2122 = vmatprep.subr.bf16.mxu1 %v2121_v5  ;;  %v2129_v21 = vpack.c.bf16 %v435_v20, %v430_v19  ;;  %v434_v24 = vld [vmem:[#allocation8 + $0xd8] sm:$0xff]  ;;  %v2133_v29 = vpack.c.bf16 %v445_v28, %v440_v27  ;;  %v439_v30 = vld [vmem:[#allocation8 + $0x100] sm:$0xff]  ;;  %v444_v31 = vld [vmem:[#allocation8 + $0x128] sm:$0xff] }
  0xcd   : > { %2414 = vset.pattern.permute.xlu0 %v2723_v0  ;;  %2124 = vmatpush1.bf16.msra.mxu1 %v2123_v10  ;;  %v2131_v26 = vpack.c.bf16 %v434_v24, %v429_v23  ;;  %v2135_v32 = vpack.c.bf16 %v444_v31, %v439_v30  ;;  %v3138_v34 = vld [vmem:[%s3032_s27 + $0x10] sm:$0xff]  ;;  %v450_v35 = vld [vmem:[#allocation8 + $0x158] sm:$0xff]  ;;  %v455_v36 = vld [vmem:[#allocation8 + $0x180] sm:$0xff]  ;;  %v2731_v24 = vmov 6  }
  0xce   : > { %2108 = vmatpush1.bf16.msra.mxu0 %v2107_v40  ;;  %1224 = vperm.xlu0 %2414, %v3065_v22   ;;  %v2137_v37 = vpack.c.bf16 %v455_v36, %v450_v35  ;;  %v449_v38 = vld [vmem:[#allocation8 + $0x150] sm:$0xff]  ;;  %v454_v40 = vld [vmem:[#allocation8 + $0x178] sm:$0xff]  ;;  %v460_v42 = vld [vmem:[#allocation8 + $0x1a8] sm:$0xff] }
  0xcf   : > { %2404 = vset.pattern.permute.xlu1 %v2726_v18  ;;  %2110 = vmatprep.subr.bf16.mxu0 %v2109_v41  ;;  %v2139_v41 = vpack.c.bf16 %v454_v40, %v449_v38  ;;  %v465_v43 = vld [vmem:[#allocation8 + $0x1d0] sm:$0xff]  ;;  %v459_v45 = vld [vmem:[#allocation8 + $0x1a0] sm:$0xff]  ;;  %v470_v48 = vld [vmem:[#allocation8 + $0x1f8] sm:$0xff] }
  0xd0   : > { %1267 = vperm.xlu1 %2404, %v3073_v33   ;;  %2126 = vmatprep.subr.bf16.mxu1 %v2125_v14  ;;  %v2141_v44 = vpack.c.bf16 %v465_v43, %v460_v42  ;;  %v475_v49 = vld [vmem:[#allocation8 + $0x220] sm:$0xff]  ;;  %v480_v55 = vld [vmem:[#allocation8 + $0x248] sm:$0xff]  ;;  %v490_v16 = vld [vmem:[#allocation10 + $0x18] sm:$0xff] }
  0xd1   : > { %2128 = vmatpush1.bf16.msra.mxu1 %v2127_v17  ;;  %v2145_v51 = vpack.c.bf16 %v475_v49, %v470_v48  ;;  %v479_v4 = vld [vmem:[#allocation8 + $0x240] sm:$0xff]  ;;  %v484_v5 = vld [vmem:[#allocation8 + $0x268] sm:$0xff]  ;;  %v421_v20 = vld [vmem:[#allocation8 + $0x70] sm:$0xff] }
  0xd2   : > { %2112 = vmatpush1.bf16.msra.mxu0 %v2111_v46  ;;  %1234 = vperm.xlu0 %2414, %v3087_v56   ;;  %v464_v46 = vld [vmem:[#allocation8 + $0x1c8] sm:$0xff]  ;;  %v2151_v6 = vpack.c.bf16 %v484_v5, %v479_v4  ;;  %v411_v7 = vld [vmem:[#allocation8 + $0x20] sm:$0xff]  ;;  %v494_v23 = vld [vmem:[#allocation10 + $0x38] sm:$0xff] }
  0xd3   : > { %2114 = vmatprep.subr.bf16.mxu0 %v2113_v47  ;;  %2130 = vmatprep.subr.bf16.mxu1 %v2129_v21  ;;  %v2143_v47 = vpack.c.bf16 %v464_v46, %v459_v45  ;;  %v416_v10 = vld [vmem:[#allocation8 + $0x48] sm:$0xff]  ;;  %v491_v14 = vld [vmem:[#allocation10 + $0x20] sm:$0xff]  ;;  %v426_v21 = vld [vmem:[#allocation8 + $0x98] sm:$0xff] }
  0xd4   : > { %2406 = vset.pattern.permute.xlu1 %v2723_v0  ;;  %v488_v12 = vld [vmem:[#allocation10 + $0x8] sm:$0xff]  ;;  %v2153_v13 = vpack.c.bf16 %v416_v10, %v411_v7  ;;  %v487_v15 = vld [vmem:[#allocation10] sm:$0xff]  ;;  %v497_v27 = vld [vmem:[#allocation10 + $0x50] sm:$0xff] }
  0xd5   : > { %909 = vperm.xlu1 %2406, %v3076_v39   ;;  %2132 = vmatpush1.bf16.msra.mxu1 %v2131_v26  ;;  %v2185_v17 = vpack.c.bf16 %v491_v14, %v488_v12  ;;  %v2187_v19 = vpack.c.bf16 %v490_v16, %v487_v15  ;;  %v2157_v26 = vpack.c.bf16 %v426_v21, %v421_v20  ;;  %v493_v28 = vld [vmem:[#allocation10 + $0x30] sm:$0xff]  ;;  %v436_v35 = vld [vmem:[#allocation8 + $0xe8] sm:$0xff]  ;;  %v503_v38 = vld [vmem:[#allocation10 + $0x80] sm:$0xff] }
  0xd6   : > { %2116 = vmatpush1.bf16.msra.mxu0 %v2115_v52  ;;  %1239 = vperm.xlu0 %2414, %v3092_v57   ;;  %v469_v52 = vld [vmem:[#allocation8 + $0x1f0] sm:$0xff]  ;;  %v2189_v30 = vpack.c.bf16 %v497_v27, %v494_v23  ;;  %v500_v36 = vld [vmem:[#allocation10 + $0x68] sm:$0xff]  ;;  %v502_v40 = vld [vmem:[#allocation10 + $0x78] sm:$0xff] }
  0xd7   : > { %2118 = vmatprep.subr.bf16.mxu0 %v2117_v53  ;;  %2134 = vmatprep.subr.bf16.mxu1 %v2133_v29  ;;  %v474_v53 = vld [vmem:[#allocation8 + $0x218] sm:$0xff]  ;;  %v496_v29 = vld [vmem:[#allocation10 + $0x48] sm:$0xff]  ;;  %v441_v43 = vld [vmem:[#allocation8 + $0x110] sm:$0xff] }
  0xd8   : > { %v2147_v54 = vpack.c.bf16 %v474_v53, %v469_v52  ;;  %v2191_v31 = vpack.c.bf16 %v496_v29, %v493_v28  ;;  %v506_v45 = vld [vmem:[#allocation10 + $0x98] sm:$0xff]  ;;  %v505_v48 = vld [vmem:[#allocation10 + $0x90] sm:$0xff]  ;;  %v508_v49 = vld [vmem:[#allocation10 + $0xa8] sm:$0xff] }
  0xd9   : > { %2407 = vset.pattern.permute.xlu1 %v2726_v18  ;;  %2136 = vmatpush1.bf16.msra.mxu1 %v2135_v32  ;;  %v431_v32 = vld [vmem:[#allocation8 + $0xc0] sm:$0xff]  ;;  %v456_v53 = vld [vmem:[#allocation8 + $0x188] sm:$0xff]  ;;  %v466_v10 = vld [vmem:[#allocation8 + $0x1d8] sm:$0xff] }
  0xda   : > { %947 = vperm.xlu1 %2407, %v3076_v39   ;;  %2120 = vmatpush1.bf16.msra.mxu0 %v2119_v58  ;;  %v485_v58 = vld [vmem:[#allocation8 + $0x270] sm:$0xff]  ;;  %v451_v52 = vld [vmem:[#allocation8 + $0x160] sm:$0xff]  ;;  %v518_v12 = vld [vmem:[#allocation10 + $0xf8] sm:$0xff] }
  0xdb   : > { %2420 = vset.pattern.permute.xlu0 %v2726_v18  ;;  %2138 = vmatprep.subr.bf16.mxu1 %v2137_v37  ;;  %v2149_v63 = vpack.c.bf16 %v485_v58, %v480_v55  ;;  %v2161_v37 = vpack.c.bf16 %v436_v35, %v431_v32  ;;  %v2199_v55 = vpack.c.bf16 %v508_v49, %v505_v48  ;;  %v511_v5 = vld [vmem:[#allocation10 + $0xc0] sm:$0xff]  ;;  %v521_v14 = vld [vmem:[#allocation10 + $0x110] sm:$0xff]  ;;  %v520_v16 = vld [vmem:[#allocation10 + $0x108] sm:$0xff] }
  0xdc   : > { %1263 = vperm.xlu0 %2420, %v3065_v22   ;;  %2154 = vmatprep.subr.bf16.mxu0 %v2153_v13  ;;  %v2169_v58 = vpack.c.bf16 %v456_v53, %v451_v52  ;;  %v517_v15 = vld [vmem:[#allocation10 + $0xf0] sm:$0xff]  ;;  %v476_v20 = vld [vmem:[#allocation8 + $0x228] sm:$0xff]  ;;  %v523_v27 = vld [vmem:[#allocation10 + $0x120] sm:$0xff] }
  0xdd   : > { %704 = vmatmul.mubr.f32.vlgmr.msra.gmra.mrb[0].mxu0 %v3098_v59  ;;  %2140 = vmatpush1.bf16.msra.mxu1 %v2139_v41  ;;  %v2193_v41 = vpack.c.bf16 %v503_v38, %v500_v36  ;;  %v524_v21 = vld [vmem:[#allocation10 + $0x128] sm:$0xff]  ;;  %v526_v28 = vld [vmem:[#allocation10 + $0x138] sm:$0xff]  ;;  %v533_v36 = vld [vmem:[#allocation10 + $0x170] sm:$0xff] }
  0xde   : > { %2408 = vset.pattern.permute.xlu1 %v2725_v2  ;;  %709 = vmatprep.mubr.f32.mxu0 %v2724_v1  ;;  %v530_v32 = vld [vmem:[#allocation10 + $0x158] sm:$0xff]  ;;  %v532_v38 = vld [vmem:[#allocation10 + $0x168] sm:$0xff]  ;;  %v489_v49 = vld [vmem:[#allocation10 + $0x10] sm:$0xff] }
  0xdf   : > { %1307 = vperm.xlu1 %2408, %v3073_v33   ;;  %2142 = vmatprep.subr.bf16.mxu1 %v2141_v44  ;;  %v446_v44 = vld [vmem:[#allocation8 + $0x138] sm:$0xff]  ;;  %v545_v53 = vld [vmem:[#allocation10 + $0x1d0] sm:$0xff] }
  0xe0   : > { %955 = vperm.xlu0 %2420, %v3110_v61   ;;  %2156 = vmatpush3.bf16.msra.mxu0 %v2153_v13  ;;  %v2165_v46 = vpack.c.bf16 %v446_v44, %v441_v43  ;;  %v537_v43 = vld [vmem:[#allocation10 + $0x190] sm:$0xff]  ;;  %v542_v52 = vld [vmem:[#allocation10 + $0x1b8] sm:$0xff] }
  0xe1   : > { %710 = vmatmul.mubr.f32.gmra.mrb[2].mxu0 %v3106_v60  ;;  %2144 = vmatpush1.bf16.msra.mxu1 %v2143_v47  ;;  %v509_v47 = vld [vmem:[#allocation10 + $0xb0] sm:$0xff] }
  0xe2   : > { %715 = vmatprep.mubr.f32.mxu0 %v2724_v1  ;;  %2146 = vmatprep.subr.bf16.mxu1 %v2145_v51  ;;  %v2197_v51 = vpack.c.bf16 %v509_v47, %v506_v45  ;;  %v540_v45 = vld [vmem:[#allocation10 + $0x1a8] sm:$0xff]  ;;  %v538_v47 = vld [vmem:[#allocation10 + $0x198] sm:$0xff] }
  0xe3   : > { %987 = vperm.xlu1 %2408, %v3076_v39   ;;  %2158 = vmatprep.subr.bf16.mxu0 %v2157_v26  ;;  %v2249_v48 = vpack.c.bf16 %v540_v45, %v537_v43  ;;  %v562_v43 = vld [vmem:[#allocation10 + $0x258] sm:$0xff]  ;;  %v513_v45 = vld [vmem:[#allocation10 + $0xd0] sm:$0xff] }
  0xe4   : > { %2427 = vset.pattern.permute.xlu0 %v2729_v11  ;;  %2160 = vmatpush3.bf16.msra.mxu0 %v2157_v26  ;;  %v527_v26 = vld [vmem:[#allocation10 + $0x140] sm:$0xff] }
  0xe5   : > { %716 = vmatmul.mubr.f32.gmra.mrb[4].mxu0 %v3116_v62  ;;  %1183 = vperm.xlu0 %2427, %v3058_v3   ;;  %v2209_v29 = vpack.c.bf16 %v527_v26, %v524_v21  ;;  %v557_v26 = vld [vmem:[#allocation10 + $0x230] sm:$0xff] }
  0xe6   : > { %721 = vmatprep.mubr.f32.mxu0 %v2724_v1  ;;  %2148 = vmatpush1.bf16.msra.mxu1 %v2147_v54  ;;  %v512_v54 = vld [vmem:[#allocation10 + $0xc8] sm:$0xff] }
  0xe7   : > { %2409 = vset.pattern.permute.xlu1 %v2728_v8  ;;  %2150 = vmatprep.subr.bf16.mxu1 %v2149_v63  ;;  %v515_v63 = vld [vmem:[#allocation10 + $0xe0] sm:$0xff] }
  0xe8   : > { %1063 = vperm.xlu1 %2409, %v3058_v3   ;;  %2162 = vmatprep.subr.bf16.mxu0 %v2161_v37  ;;  %v2201_v4 = vpack.c.bf16 %v515_v63, %v512_v54  ;;  %v543_v54 = vld [vmem:[#allocation10 + $0x1c0] sm:$0xff]  ;;  %v2221_v63 = vpack.c.bf16 %v545_v53, %v542_v52 }
  0xe9   : > { %722 = vmatmul.mubr.f32.gmra.mrb[6].mxu0 %v3123_v9  ;;  %2428 = vset.pattern.permute.xlu0 %v2728_v8 }
  0xea   : > { %2083 = vmatprep.mubr.f32.mxu0 %v3098_v59  ;;  %1383 = vperm.xlu0 %2428, %v3065_v22  }
  0xeb   : > { %2152 = vmatpush1.bf16.msra.mxu1 %v2151_v6  ;;  %2164 = vmatpush3.bf16.msra.mxu0 %v2161_v37  ;;  %v514_v6 = vld [vmem:[#allocation10 + $0xd8] sm:$0xff]  ;;  %v529_v37 = vld [vmem:[#allocation10 + $0x150] sm:$0xff] }
  0xec   : > { %2410 = vset.pattern.permute.xlu1 %v2726_v18  ;;  %2186 = vmatprep.subr.bf16.mxu1 %v2185_v17  ;;  %v2203_v7 = vpack.c.bf16 %v514_v6, %v511_v5  ;;  %v2205_v17 = vpack.c.bf16 %v521_v14, %v518_v12  ;;  %v544_v5 = vld [vmem:[#allocation10 + $0x1c8] sm:$0xff]  ;;  %v495_v6 = vld [vmem:[#allocation10 + $0x40] sm:$0xff]  ;;  %v549_v14 = vld [vmem:[#allocation10 + $0x1f0] sm:$0xff] }
  0xed   : > { %1271 = vperm.xlu1 %2410, %v3087_v56   ;;  %2166 = vmatprep.subr.bf16.mxu0 %v2165_v46  ;;  %v548_v12 = vld [vmem:[#allocation10 + $0x1e8] sm:$0xff] }
  0xee   : > { %1387 = vperm.xlu0 %2428, %v3073_v33   ;;  %793 = vmatmul.mubr.f32.vlgmr.msra.gmra.mrb[0].mxu1 %v3098_v59  ;;  %v499_v59 = vld [vmem:[#allocation10 + $0x60] sm:$0xff] }
  0xef   : > { %2188 = vmatpush1.bf16.msra.mxu1 %v2187_v19  ;;  %798 = vmatprep.mubr.f32.mxu1 %v2724_v1  ;;  %v2195_v42 = vpack.c.bf16 %v502_v40, %v499_v59  ;;  %v471_v19 = vld [vmem:[#allocation8 + $0x200] sm:$0xff]  ;;  %v2213_v59 = vpack.c.bf16 %v533_v36, %v530_v32  ;;  %v2215_v40 = vpack.c.bf16 %v532_v38, %v529_v37  ;;  %v560_v37 = vld [vmem:[#allocation10 + $0x248] sm:$0xff] }
  0xf0   : > { %2190 = vmatprep.subr.bf16.mxu1 %v2189_v30  ;;  %2168 = vmatpush3.bf16.msra.mxu0 %v2165_v46  ;;  %v2177_v23 = vpack.c.bf16 %v476_v20, %v471_v19  ;;  %v481_v30 = vld [vmem:[#allocation8 + $0x250] sm:$0xff]  ;;  %v535_v46 = vld [vmem:[#allocation10 + $0x180] sm:$0xff]  ;;  %v504_v20 = vld [vmem:[#allocation10 + $0x88] sm:$0xff] }
  0xf1   : > { %2411 = vset.pattern.permute.xlu1 %v2727_v25  ;;  %2170 = vmatprep.subr.bf16.mxu0 %v2169_v58  ;;  %v501_v19 = vld [vmem:[#allocation10 + $0x70] sm:$0xff]  ;;  %v507_v32 = vld [vmem:[#allocation10 + $0xa0] sm:$0xff] }
  0xf2   : > { %1347 = vperm.xlu1 %2411, %v3073_v33   ;;  %1067 = vperm.xlu0 %2428, %v3076_v39   ;;  %v563_v38 = vld [vmem:[#allocation10 + $0x260] sm:$0xff] }
  0xf3   : > { %2192 = vmatpush1.bf16.msra.mxu1 %v2191_v31  ;;  %v486_v31 = vld [vmem:[#allocation8 + $0x278] sm:$0xff] }
  0xf4   : > { %2194 = vmatprep.subr.bf16.mxu1 %v2193_v41  ;;  %799 = vmatmul.mubr.f32.gmra.mrb[2].mxu1 %v3106_v60  ;;  %v2181_v35 = vpack.c.bf16 %v486_v31, %v481_v30  ;;  %v536_v41 = vld [vmem:[#allocation10 + $0x188] sm:$0xff] }
  0xf5   : > { %804 = vmatprep.mubr.f32.mxu1 %v2724_v1  ;;  %2172 = vmatpush3.bf16.msra.mxu0 %v2169_v58  ;;  %v546_v58 = vld [vmem:[#allocation10 + $0x1d8] sm:$0xff]  ;;  %v556_v30 = vld [vmem:[#allocation10 + $0x228] sm:$0xff] }
  0xf6   : > { %2412 = vset.pattern.permute.xlu1 %v2723_v0  ;;  %1395 = vperm.xlu0 %2428, %v3092_v57  }
  0xf7   : > { %914 = vperm.xlu1 %2412, %v3138_v34   ;;  %2196 = vmatpush1.bf16.msra.mxu1 %v2195_v42  ;;  %v539_v42 = vld [vmem:[#allocation10 + $0x1a0] sm:$0xff] }
  0xf8   : > { %2198 = vmatprep.subr.bf16.mxu1 %v2197_v51  ;;  %805 = vmatmul.mubr.f32.gmra.mrb[4].mxu1 %v3116_v62  ;;  %v2217_v44 = vpack.c.bf16 %v539_v42, %v536_v41  ;;  %v492_v51 = vld [vmem:[#allocation10 + $0x28] sm:$0xff]  ;;  %v559_v42 = vld [vmem:[#allocation10 + $0x240] sm:$0xff] }
  0xf9   : > { %810 = vmatprep.mubr.f32.mxu1 %v2724_v1  ;;  %v2211_v1 = vpack.c.bf16 %v526_v28, %v523_v27  ;;  %v555_v27 = vld [vmem:[#allocation10 + $0x220] sm:$0xff]  ;;  %v564_v41 = vld [vmem:[#allocation10 + $0x268] sm:$0xff] }
  0xfa   : > { %2437 = vset.pattern.permute.xlu0 %v2730_v50 }
  0xfb   : > { %2413 = vset.pattern.permute.xlu1 %v2726_v18  ;;  %1423 = vperm.xlu0 %2437, %v3065_v22  }
  0xfc   : > { %951 = vperm.xlu1 %2413, %v3138_v34   ;;  %2200 = vmatpush1.bf16.msra.mxu1 %v2199_v55  ;;  %v2219_v55 = vpack.c.bf16 %v538_v47, %v535_v46  ;;  %v516_v46 = vld [vmem:[#allocation10 + $0xe8] sm:$0xff] }
  0xfd   : > { %2202 = vmatprep.subr.bf16.mxu1 %v2201_v4  ;;  %811 = vmatmul.mubr.f32.gmra.mrb[6].mxu1 %v3123_v9  ;;  %v541_v4 = vld [vmem:[#allocation10 + $0x1b0] sm:$0xff]  ;;  %v2267_v47 = vpack.c.bf16 %v516_v46, %v513_v45 }
  0xff   : > { %1427 = vperm.xlu0 %2437, %v3073_v33  }
 0x100   : > { %2415 = vset.pattern.permute.xlu1 %v2730_v50  ;;  %2204 = vmatpush1.bf16.msra.mxu1 %v2203_v7  ;;  %v2253_v7 = vpack.c.bf16 %v546_v58, %v543_v54  ;;  %v570_v54 = vld [vmem:[#allocation10 + $0x298] sm:$0xff]  ;;  %v568_v58 = vld [vmem:[#allocation10 + $0x288] sm:$0xff] }
 0x101   : > { %1103 = vperm.xlu1 %2415, %v3058_v3   ;;  %2206 = vmatprep.subr.bf16.mxu1 %v2205_v17  ;;  %v547_v17 = vld [vmem:[#allocation10 + $0x1e0] sm:$0xff] }
 0x103   : > { %1431 = vperm.xlu0 %2437, %v3087_v56  }
 0x105   : > { %2416 = vset.pattern.permute.xlu1 %v2725_v2 }
 0x106   : > { %1311 = vperm.xlu1 %2416, %v3087_v56  }
 0x107   : > { %1111 = vperm.xlu0 %2437, %v3138_v34  }
 0x10a   : > { %2417 = vset.pattern.permute.xlu1 %v2731_v24 }
 0x10b   : > { %1463 = vperm.xlu1 %2417, %v3065_v22   ;;  %1115 = vperm.xlu0 %2437, %v3110_v61  }
 0x10f   : > { %2418 = vset.pattern.permute.xlu1 %v2725_v2  ;;  %2442 = vset.pattern.permute.xlu0 %v2731_v24 }
 0x110   : > { %991 = vperm.xlu1 %2418, %v3138_v34   ;;  %1467 = vperm.xlu0 %2442, %v3073_v33  }
 0x114   : > { %2419 = vset.pattern.permute.xlu1 %v2731_v24  ;;  %1147 = vperm.xlu0 %2442, %v3076_v39  }
 0x115   : > { %1143 = vperm.xlu1 %2419, %v3058_v3   ;;  %v461_v3 = vld [vmem:[#allocation8 + $0x1b0] sm:$0xff] }
 0x116   : > { %v2173_v13 = vpack.c.bf16 %v466_v10, %v461_v3  ;;  %v498_v3 = vld [vmem:[#allocation10 + $0x58] sm:$0xff]  ;;  %v2223_v10 = vpack.c.bf16 %v544_v5, %v541_v4  ;;  %v519_v4 = vld [vmem:[#allocation10 + $0x100] sm:$0xff] }
 0x117   : > { %v522_v5 = vld [vmem:[#allocation10 + $0x118] sm:$0xff] }
 0x118   : > { %1151 = vperm.xlu0 %2442, %v3138_v34   ;;  %2174 = vmatprep.subr.bf16.mxu0 %v2173_v13 }
 0x119   : > { %2421 = vset.pattern.permute.xlu1 %v2726_v18  ;;  %v2207_v18 = vpack.c.bf16 %v520_v16, %v517_v15  ;;  %2176 = vmatpush3.bf16.msra.mxu0 %v2173_v13  ;;  %v551_v13 = vld [vmem:[#allocation10 + $0x200] sm:$0xff]  ;;  %v552_v16 = vld [vmem:[#allocation10 + $0x208] sm:$0xff] }
 0x11a   : > { %1275 = vperm.xlu1 %2421, %v3092_v57   ;;  %2178 = vmatprep.subr.bf16.mxu0 %v2177_v23  ;;  %v2225_v15 = vpack.c.bf16 %v551_v13, %v548_v12  ;;  %v576_v13 = vld [vmem:[#allocation10 + $0x2c8] sm:$0xff] }
 0x11b   : > { %2208 = vmatpush1.bf16.msra.mxu1 %v2207_v18  ;;  %v550_v18 = vld [vmem:[#allocation10 + $0x1f8] sm:$0xff] }
 0x11c   : > { %1155 = vperm.xlu0 %2442, %v3110_v61   ;;  %2210 = vmatprep.subr.bf16.mxu1 %v2209_v29  ;;  %v2227_v21 = vpack.c.bf16 %v550_v18, %v547_v17  ;;  %v558_v29 = vld [vmem:[#allocation10 + $0x238] sm:$0xff]  ;;  %v528_v18 = vld [vmem:[#allocation10 + $0x148] sm:$0xff] }
 0x11d   : > { %2180 = vmatpush3.bf16.msra.mxu0 %v2177_v23  ;;  %v554_v23 = vld [vmem:[#allocation10 + $0x218] sm:$0xff]  ;;  %v2261_v31 = vpack.c.bf16 %v558_v29, %v555_v27 }
 0x11e   : > { %2422 = vset.pattern.permute.xlu1 %v2727_v25  ;;  %2182 = vmatprep.subr.bf16.mxu0 %v2181_v35  ;;  %v2229_v28 = vpack.c.bf16 %v557_v26, %v554_v23  ;;  %v581_v23 = vld [vmem:[#allocation10 + $0x2f0] sm:$0xff]  ;;  %v579_v26 = vld [vmem:[#allocation10 + $0x2e0] sm:$0xff]  ;;  %v582_v29 = vld [vmem:[#allocation10 + $0x2f8] sm:$0xff] }
 0x11f   : > { %1351 = vperm.xlu1 %2422, %v3087_v56   ;;  %2212 = vmatpush1.bf16.msra.mxu1 %v2211_v1  ;;  %v553_v1 = vld [vmem:[#allocation10 + $0x210] sm:$0xff] }
 0x120   : > { %2445 = vset.pattern.permute.xlu0 %v2729_v11  ;;  %2214 = vmatprep.subr.bf16.mxu1 %v2213_v59  ;;  %v2231_v36 = vpack.c.bf16 %v556_v30, %v553_v1  ;;  %v561_v59 = vld [vmem:[#allocation10 + $0x250] sm:$0xff]  ;;  %v580_v30 = vld [vmem:[#allocation10 + $0x2e8] sm:$0xff] }
 0x121   : > { %2184 = vmatpush3.bf16.msra.mxu0 %v2181_v35  ;;  %v577_v1 = vld [vmem:[#allocation10 + $0x2d0] sm:$0xff] }
 0x122   : > { %2250 = vmatprep.subr.bf16.mxu0 %v2249_v48  ;;  %v2235_v48 = vpack.c.bf16 %v562_v43, %v559_v42 }
 0x123   : > { %2423 = vset.pattern.permute.xlu1 %v2729_v11  ;;  %2216 = vmatpush1.bf16.msra.mxu1 %v2215_v40  ;;  %v2233_v40 = vpack.c.bf16 %v563_v38, %v560_v37 }
 0x124   : > { %1503 = vperm.xlu1 %2423, %v3065_v22   ;;  %v2251_v22 = vpack.c.bf16 %v492_v51, %v489_v49  ;;  %2218 = vmatprep.subr.bf16.mxu1 %v2217_v44  ;;  %v2265_v44 = vpack.c.bf16 %v564_v41, %v561_v59  ;;  %v566_v49 = vld [vmem:[#allocation10 + $0x278] sm:$0xff]  ;;  %v569_v51 = vld [vmem:[#allocation10 + $0x290] sm:$0xff] }
 0x125   : > { %2084 = vmatmul.mubr.f32.vlgmr.msra.gmra.mrb[8].mxu0 %v3106_v60  ;;  %v2257_v60 = vpack.c.bf16 %v552_v16, %v549_v14  ;;  %v2237_v53 = vpack.c.bf16 %v569_v51, %v566_v49  ;;  %v571_v14 = vld [vmem:[#allocation10 + $0x2a0] sm:$0xff] }
 0x126   : > { %2252 = vmatpush3.bf16.msra.mxu0 %v2251_v22  ;;  %2086 = vmatprep.mubr.f32.mxu0 %v3116_v62  ;;  %v2259_v62 = vpack.c.bf16 %v504_v20, %v501_v19  ;;  %v567_v22 = vld [vmem:[#allocation10 + $0x280] sm:$0xff] }
 0x127   : > { %2220 = vmatpush1.bf16.msra.mxu1 %v2219_v55  ;;  %2254 = vmatprep.subr.bf16.mxu0 %v2253_v7  ;;  %v565_v55 = vld [vmem:[#allocation10 + $0x270] sm:$0xff]  ;;  %v2271_v7 = vpack.c.bf16 %v522_v5, %v519_v4  ;;  %v585_v4 = vlaneseq }
 0x128   : > { %2424 = vset.pattern.permute.xlu1 %v2723_v0  ;;  %v2255_v0 = vpack.c.bf16 %v498_v3, %v495_v6  ;;  %2222 = vmatprep.subr.bf16.mxu1 %v2221_v63  ;;  %v2269_v63 = vpack.c.bf16 %v570_v54, %v567_v22  ;;  %v2239_v6 = vpack.c.bf16 %v568_v58, %v565_v55  ;;  %v572_v3 = vld [vmem:[#allocation10 + $0x2a8] sm:$0xff] }
 0x129   : > { %919 = vperm.xlu1 %2424, %v3110_v61   ;;  %2087 = vmatmul.mubr.f32.gmra.mrb[10].mxu0 %v3123_v9  ;;  %v510_v9 = vld [vmem:[#allocation10 + $0xb8] sm:$0xff] }
 0x12a   : > { %2256 = vmatpush3.bf16.msra.mxu0 %v2255_v0  ;;  %v2263_v35 = vpack.c.bf16 %v510_v9, %v507_v32  ;;  %v575_v0 = vld [vmem:[#allocation10 + $0x2c0] sm:$0xff]  ;;  %v2277_v32 = vpack.c.bf16 %v582_v29, %v579_v26  ;;  %v2247_v9 = vpack.c.bf16 %v580_v30, %v577_v1 }
 0x12b   : > { %2224 = vmatpush1.bf16.msra.mxu1 %v2223_v10  ;;  %2258 = vmatprep.subr.bf16.mxu0 %v2257_v60  ;;  %v573_v10 = vld [vmem:[#allocation10 + $0x2b0] sm:$0xff]  ;;  %v2241_v12 = vpack.c.bf16 %v575_v0, %v572_v3 }
 0x12c   : > { %2226 = vmatprep.subr.bf16.mxu1 %v2225_v15  ;;  %v574_v15 = vld [vmem:[#allocation10 + $0x2b8] sm:$0xff]  ;;  %v2273_v17 = vpack.c.bf16 %v576_v13, %v573_v10  ;;  %v525_v60 = vld [vmem:[#allocation10 + $0x130] sm:$0xff]  ;;  %v3301_v10 = vld [vmem:[%s3692_s4] sm:$0x1f] }
 0x12d   : > { %2425 = vset.pattern.permute.xlu1 %v2727_v25  ;;  %v2243_v19 = vpack.c.bf16 %v574_v15, %v571_v14  ;;  %v2275_v20 = vpack.c.bf16 %v528_v18, %v525_v60  ;;  %3766 = vst [vmem:[#allocation36_spill] sm:$0xff] %v3301_v10 }
 0x12e   : > { %1031 = vperm.xlu1 %2425, %v3138_v34   ;;  %2260 = vmatpush3.bf16.msra.mxu0 %v2259_v62 }
 0x12f   : > { %2228 = vmatpush1.bf16.msra.mxu1 %v2227_v21  ;;  %2262 = vmatprep.subr.bf16.mxu0 %v2261_v31 }
 0x130   : > { %2230 = vmatprep.subr.bf16.mxu1 %v2229_v28 }
 0x132   : > { %2426 = vset.pattern.permute.xlu1 %v2730_v50  ;;  %2264 = vmatpush3.bf16.msra.mxu0 %v2263_v35  ;;  %v531_v35 = vld [vmem:[#allocation10 + $0x160] sm:$0xff] }
 0x133   : > { %1107 = vperm.xlu1 %2426, %v3076_v39   ;;  %2232 = vmatpush1.bf16.msra.mxu1 %v2231_v36  ;;  %v534_v36 = vld [vmem:[#allocation10 + $0x178] sm:$0xff] }
 0x134   : > { %2266 = vmatprep.subr.bf16.mxu0 %v2265_v44  ;;  %2234 = vmatprep.subr.bf16.mxu1 %v2233_v40  ;;  %v2279_v37 = vpack.c.bf16 %v534_v36, %v531_v35 }
 0x136   : > { %2268 = vmatpush3.bf16.msra.mxu0 %v2267_v47 }
 0x137   : > { %2429 = vset.pattern.permute.xlu1 %v2725_v2  ;;  %2236 = vmatpush1.bf16.msra.mxu1 %v2235_v48 }
 0x138   : > { %1315 = vperm.xlu1 %2429, %v3092_v57   ;;  %2238 = vmatprep.subr.bf16.mxu1 %v2237_v53 }
 0x139   : > { %2270 = vmatprep.subr.bf16.mxu0 %v2269_v63 }
 0x13a   : > { %2272 = vmatpush3.bf16.msra.mxu0 %v2271_v7 }
 0x13b   : > { %v3192_v52 = vpop.permute.xlu1 %904  ;;  %2240 = vmatpush1.bf16.msra.mxu1 %v2239_v6  ;;  %2274 = vmatprep.subr.bf16.mxu0 %v2273_v17  ;;  %v3208_v27 = vpop.permute.xlu0 %983  ;;  %v586_v6 = vshrl.u32 %v585_v4, 7 }
 0x13c   : > { %3751 = vst [vmem:[#allocation21_spill] sm:$0xff] %v3192_v52  ;;  %2430 = vset.pattern.permute.xlu1 %v2728_v8  ;;  %2242 = vmatprep.subr.bf16.mxu1 %v2241_v12  ;;  %3753 = vst [vmem:[#allocation23_spill] sm:$0xff] %v3208_v27 }
 0x13d   : > { %1391 = vperm.xlu1 %2430, %v3087_v56   ;;  %v3296_v0 = vsub.s32 0, %v586_v6  ;;  %v3303_v12 = vsub.s32 1, %v586_v6  ;;  %v3315_v18 = vsub.s32 2, %v586_v6  ;;  %v3328_v29 = vsub.s32 6, %v586_v6 }
 0x13e   : > { %2276 = vmatpush3.bf16.msra.mxu0 %v2275_v20  ;;  %v3332_v30 = vsub.s32 5, %v586_v6 }
 0x13f   : > { %2244 = vmatpush1.bf16.msra.mxu1 %v2243_v19  ;;  %2278 = vmatprep.subr.bf16.mxu0 %v2277_v32  ;;  %v588_v14 = vrot.slane %v3301_v10, %v3296_v0  ;;  %v3313_v17 = vrot.slane %v3301_v10, %v3303_v12  ;;  %v3334_v32 = vsub.s32 7, %v586_v6 }
 0x140   : > { %v3196_v16 = vpop.permute.xlu1 %943  ;;  %v3216_v59 = vpop.permute.xlu0 %1343 }
 0x141   : > { %3752 = vst [vmem:[#allocation22_spill] sm:$0xff] %v3196_v16  ;;  %2431 = vset.pattern.permute.xlu1 %v2725_v2  ;;  %v578_v2 = vld [vmem:[#allocation10 + $0x2d8] sm:$0xff]  ;;  %3770 = vst [vmem:[#allocation40_spill] sm:$0xff] %v3334_v32 }
 0x142   : > { %995 = vperm.xlu1 %2431, %v3110_v61   ;;  %v2245_v28 = vpack.c.bf16 %v581_v23, %v578_v2  ;;  %2280 = vmatpush3.bf16.msra.mxu0 %v2279_v37  ;;  %v3321_v23 = vsub.s32 3, %v586_v6 }
 0x144   : > { %2246 = vmatprep.subr.bf16.mxu1 %v2245_v28  ;;  %v3223_v41 = vpop.permute.xlu0 %1023  ;;  %v3326_v28 = vsub.s32 4, %v586_v6 }
 0x145   : > { %v3200_v62 = vpop.permute.xlu1 %1303  ;;  %2248 = vmatpush1.bf16.msra.mxu1 %v2247_v9  ;;  %3754 = vst [vmem:[#allocation24_spill] sm:$0xff] %v3223_v41 }
 0x146   : > { %2432 = vset.pattern.permute.xlu1 %v2728_v8 }
 0x147   : > { %1071 = vperm.xlu1 %2432, %v3138_v34  }
 0x148   : > { %v3230_v42 = vpop.permute.xlu0 %1027 }
 0x14a   : > { %v3204_v21 = vpop.permute.xlu1 %1229 }
 0x14b   : > { %2433 = vset.pattern.permute.xlu1 %v2727_v25 }
 0x14c   : > { %1355 = vperm.xlu1 %2433, %v3092_v57  }
 0x14f   : > { %v3210_v31 = vpop.permute.xlu1 %1267 }
 0x150   : > { %2434 = vset.pattern.permute.xlu1 %v2729_v11 }
 0x151   : > { %1507 = vperm.xlu1 %2434, %v3073_v33  }
 0x154   : > { %v3214_v38 = vpop.permute.xlu1 %909 }
 0x155   : > { %2435 = vset.pattern.permute.xlu1 %v2727_v25  ;;  %v3236_v25 = vpop.permute.xlu0 %1224 }
 0x156   : > { %1035 = vperm.xlu1 %2435, %v3110_v61  }
 0x159   : > { %v3220_v40 = vpop.permute.xlu1 %947  ;;  %v3244_v45 = vpop.permute.xlu0 %1234 }
 0x15a   : > { %2436 = vset.pattern.permute.xlu1 %v2729_v11 }
 0x15b   : > { %1187 = vperm.xlu1 %2436, %v3076_v39  }
 0x15e   : > { %v3226_v33 = vpop.permute.xlu1 %1307 }
 0x15f   : > { %2438 = vset.pattern.permute.xlu1 %v2731_v24 }
 0x160   : > { %1471 = vperm.xlu1 %2438, %v3087_v56  }
 0x162   : > { %v3232_v43 = vpop.permute.xlu1 %987 }
 0x164   : > { %2439 = vset.pattern.permute.xlu1 %v2728_v8  ;;  %v3250_v8 = vpop.permute.xlu0 %1239 }
 0x165   : > { %1075 = vperm.xlu1 %2439, %v3110_v61   ;;  %3756 = vst [vmem:[#allocation26_spill] sm:$0xff] %v3250_v8 }
 0x167   : > { %v3238_v44 = vpop.permute.xlu1 %1063 }
 0x168   : > { %3755 = vst [vmem:[#allocation25_spill] sm:$0xff] %v3238_v44 }
 0x169   : > { %2440 = vset.pattern.permute.xlu1 %v2730_v50  ;;  %v1264_v50 = vpop.permute.xlu0 %1263 }
 0x16a   : > { %1435 = vperm.xlu1 %2440, %v3092_v57  }
 0x16c   : > { %v3242_v39 = vpop.permute.xlu1 %1271 }
 0x16e   : > { %2441 = vset.pattern.permute.xlu1 %v2729_v11 }
 0x16f   : > { %1511 = vperm.xlu1 %2441, %v3087_v56   ;;  %v3261_v56 = vpop.permute.xlu0 %955 }
 0x171   : > { %v3248_v46 = vpop.permute.xlu1 %1347 }
 0x173   : > { %1191 = vperm.xlu1 %2441, %v3138_v34   ;;  %v3266_v34 = vpop.permute.xlu0 %1183 }
 0x174   : > { %3758 = vst [vmem:[#allocation28_spill] sm:$0xff] %v3266_v34 }
 0x176   : > { %v3253_v47 = vpop.permute.xlu1 %914 }
 0x177   : > { %2443 = vset.pattern.permute.xlu1 %v2731_v24  ;;  %v3272_v22 = vpop.permute.xlu0 %1383 }
 0x178   : > { %1475 = vperm.xlu1 %2443, %v3092_v57   ;;  %3760 = vst [vmem:[#allocation30_spill] sm:$0xff] %v3272_v22 }
 0x17b   : > { %v3257_v48 = vpop.permute.xlu1 %951  ;;  %v3276_v54 = vpop.permute.xlu0 %1387 }
 0x17c   : > { %2444 = vset.pattern.permute.xlu1 %v2729_v11 }
 0x17d   : > { %1515 = vperm.xlu1 %2444, %v3092_v57  }
 0x17f   : > { %v3280_v57 = vpop.permute.xlu0 %1067 }
 0x180   : > { %v3263_v49 = vpop.permute.xlu1 %1103 }
 0x181   : > { %3757 = vst [vmem:[#allocation27_spill] sm:$0xff] %v3263_v49  ;;  %1195 = vperm.xlu1 %2444, %v3110_v61  }
 0x183   : > { %v3284_v58 = vpop.permute.xlu0 %1395 }
 0x184   : > { %3763 = vst [vmem:[#allocation33_spill] sm:$0xff] %v3284_v58 }
 0x185   : > { %v3268_v51 = vpop.permute.xlu1 %1311 }
 0x187   : > { %v3288_v63 = vpop.permute.xlu0 %1423 }
 0x188   : > { %3764 = vst [vmem:[#allocation34_spill] sm:$0xff] %v3288_v63 }
 0x18a   : > { %v3270_v24 = vpop.permute.xlu1 %1463 }
 0x18b   : > { %3759 = vst [vmem:[#allocation29_spill] sm:$0xff] %v3270_v24  ;;  %v3294_v3 = vpop.permute.xlu0 %1427 }
 0x18f   : > { %v3274_v53 = vpop.permute.xlu1 %991  ;;  %v3309_v15 = vpop.permute.xlu0 %1431 }
 0x190   : > { %3767 = vst [vmem:[#allocation37_spill] sm:$0xff] %v3309_v15 }
 0x193   : > { %v3330_v1 = vpop.permute.xlu0 %1111 }
 0x194   : > { %v3278_v11 = vpop.permute.xlu1 %1143  ;;  %3769 = vst [vmem:[#allocation39_spill] sm:$0xff] %v3330_v1 }
 0x195   : > { %3761 = vst [vmem:[#allocation31_spill] sm:$0xff] %v3278_v11 }
 0x197   : > { %v3385_v34 = vpop.permute.xlu0 %1115 }
 0x198   : > { %3773 = vst [vmem:[#allocation43_spill] sm:$0xff] %v3385_v34 }
 0x199   : > { %v3282_v55 = vpop.permute.xlu1 %1275 }
 0x19a   : > { %3762 = vst [vmem:[#allocation32_spill] sm:$0xff] %v3282_v55 }
 0x19b   : > { %v1468_v63 = vpop.permute.xlu0 %1467 }
 0x19e   : > { %v3286_v61 = vpop.permute.xlu1 %1351 }
 0x1a3   : > { %v3290_v5 = vpop.permute.xlu1 %1503 }
 0x1a4   : > { %3765 = vst [vmem:[#allocation35_spill] sm:$0xff] %v3290_v5 }
 0x1a8   : > { %v3292_v7 = vpop.permute.xlu1 %919 }
 0x1ad   : > { %v3305_v13 = vpop.permute.xlu1 %1031 }
 0x1b0   : > { %v705_v60 = vpop.f32.mrb[0].mxu0 }
 0x1b1   : > { %v3317_v19 = vadd.f32 %v705_v60, %v588_v14  ;;  %v707_v2 = vpop.f32.mrb[1].mxu0 }
 0x1b2   : > { %v3319_v20 = vpop.permute.xlu1 %1107  ;;  %v3324_v26 = vadd.f32 %v707_v2, %v3313_v17 }
 0x1b3   : > { %3768 = vst [vmem:[#allocation38_spill] sm:$0xff] %v3317_v19 }
 0x1b4   : > { %v711_v36 = vpop.f32.mrb[2].mxu0  ;;  %v1245_v37 = vrot.slane %v3324_v26, %v3296_v0  ;;  %v1281_v4 = vrot.slane %v3324_v26, %v3303_v12  ;;  %v1321_v60 = vrot.slane %v3324_v26, %v3315_v18 }
 0x1b5   : > { %v3348_v2 = vadd.f32 %v711_v36, %v588_v14  ;;  %v713_v10 = vpop.f32.mrb[3].mxu0 }
 0x1b6   : > { %v3357_v15 = vadd.f32 %v713_v10, %v3313_v17  ;;  %v3362_v8 = vmul.f32 %v1245_v37, %v3236_v25  ;;  %v3372_v9 = vmul.f32 %v1281_v4, %v1264_v50  ;;  %v3375_v10 = vmul.f32 %v1321_v60, %v3200_v62 }
 0x1b7   : > { %v3359_v55 = vpop.permute.xlu1 %1315  ;;  %v929_v35 = vrot.slane %v3348_v2, %v3296_v0  ;;  %v965_v58 = vrot.slane %v3348_v2, %v3303_v12  ;;  %v1005_v4 = vrot.slane %v3348_v2, %v3315_v18  ;;  %v1045_v60 = vrot.slane %v3348_v2, %v3321_v23 }
 0x1b8   : > { %3771 = vst [vmem:[#allocation41_spill] sm:$0xff] %v3357_v15  ;;  %3772 = vst [vmem:[#allocation42_spill] sm:$0xff] %v3359_v55  ;;  %v717_v55 = vpop.f32.mrb[4].mxu0  ;;  %v1249_v25 = vrot.slane %v3357_v15, %v3296_v0  ;;  %v1285_v37 = vrot.slane %v3357_v15, %v3303_v12  ;;  %v1325_v6 = vrot.slane %v3357_v15, %v3315_v18 }
 0x1b9   : > { %v1365_v36 = vrot.slane %v3357_v15, %v3321_v23  ;;  %v719_v1 = vpop.f32.mrb[5].mxu0  ;;  %v1405_v62 = vrot.slane %v3357_v15, %v3326_v28  ;;  %v1445_v50 = vrot.slane %v3357_v15, %v3332_v30  ;;  %v3395_v11 = vadd.f32 %v717_v55, %v588_v14 }
 0x1ba   : > { %v3398_v49 = vadd.f32 %v719_v1, %v3313_v17  ;;  %v1259_v44 = vmul.f32 %v1249_v25, %v3204_v21  ;;  %v1295_v34 = vmul.f32 %v1285_v37, %v3210_v31  ;;  %v1335_v5 = vmul.f32 %v1325_v6, %v3226_v33 }
 0x1bb   : > { %v1375_v27 = vmul.f32 %v1365_v36, %v3248_v46  ;;  %v1415_v16 = vmul.f32 %v1405_v62, %v3276_v54  ;;  %v1485_v24 = vrot.slane %v3357_v15, %v3328_v29  ;;  %v1455_v25 = vmul.f32 %v1445_v50, %v3294_v3 }
 0x1bc   : > { %v1392_v41 = vpop.permute.xlu1 %1391  ;;  %v1253_v55 = vrot.slane %v3398_v49, %v3296_v0  ;;  %v1289_v1 = vrot.slane %v3398_v49, %v3303_v12  ;;  %v1329_v21 = vrot.slane %v3398_v49, %v3315_v18  ;;  %v1369_v31 = vrot.slane %v3398_v49, %v3321_v23  ;;  %v723_v33 = vpop.f32.mrb[6].mxu0 }
 0x1bd   : > { %v1409_v46 = vrot.slane %v3398_v49, %v3326_v28  ;;  %v3417_v54 = vadd.f32 %v723_v33, %v588_v14  ;;  %v725_v6 = vpop.f32.mrb[7].mxu0  ;;  %v1299_v36 = vadd.f32 %v1295_v34, %v1259_v44  ;;  %v939_v19 = vmul.f32 %v929_v35, %v3214_v38 }
 0x1be   : > { %v1260_v37 = vmul.f32 %v1253_v55, %v3244_v45  ;;  %v1296_v62 = vmul.f32 %v1289_v1, %v3242_v39  ;;  %v1336_v15 = vmul.f32 %v1329_v21, %v3268_v51  ;;  %v1376_v52 = vmul.f32 %v1369_v31, %v3286_v61 }
 0x1bf   : > { %v1416_v32 = vmul.f32 %v1409_v46, %v1392_v41  ;;  %v1339_v22 = vadd.f32 %v1335_v5, %v1299_v36  ;;  %v937_v14 = vrot.slane %v3417_v54, %v3296_v0  ;;  %v973_v34 = vrot.slane %v3417_v54, %v3303_v12 }
 0x1c0   : > { %v1300_v33 = vadd.f32 %v1296_v62, %v1260_v37  ;;  %v1013_v39 = vrot.slane %v3417_v54, %v3315_v18  ;;  %v975_v45 = vmul.f32 %v965_v58, %v3220_v40  ;;  %v1015_v41 = vmul.f32 %v1005_v4, %v3232_v43 }
 0x1c1   : > { %v996_v44 = vpop.permute.xlu1 %995  ;;  %v1379_v51 = vadd.f32 %v1375_v27, %v1339_v22  ;;  %v941_v38 = vmul.f32 %v937_v14, %v3292_v7  ;;  %v1055_v61 = vmul.f32 %v1045_v60, %v3230_v42  ;;  %v977_v3 = vmul.f32 %v973_v34, %v3261_v56  ;;  %v1148_v7 = vpop.permute.xlu0 %1147  ;;  %v3775_v34 = vld [vmem:[#allocation30_spill] sm:$0xff] }
 0x1c2   : > { %v1340_v5 = vadd.f32 %v1336_v15, %v1300_v33  ;;  %v1017_v35 = vmul.f32 %v1013_v39, %v996_v44  ;;  %v979_v50 = vadd.f32 %v975_v45, %v939_v19  ;;  %v1085_v1 = vrot.slane %v3348_v2, %v3326_v28 }
 0x1c3   : > { %v1419_v55 = vadd.f32 %v1415_v16, %v1379_v51  ;;  %v1125_v21 = vrot.slane %v3348_v2, %v3332_v30  ;;  %v1165_v27 = vrot.slane %v3348_v2, %v3328_v29  ;;  %v981_v22 = vadd.f32 %v977_v3, %v941_v38  ;;  %v3779_v51 = vld [vmem:[#allocation40_spill] sm:$0xff]  ;;  %v3780_v38 = vld [vmem:[#allocation21_spill] sm:$0xff] }
 0x1c4   : > { %v1380_v40 = vadd.f32 %v1376_v52, %v1340_v5  ;;  %v1019_v43 = vadd.f32 %v1015_v41, %v979_v50  ;;  %v933_v42 = vrot.slane %v3395_v11, %v3296_v0  ;;  %v3445_v56 = vadd.f32 %v725_v6, %v3313_v17  ;;  %v3781_v41 = vld [vmem:[#allocation38_spill] sm:$0xff]  ;;  %v3783_v3 = vld [vmem:[#allocation29_spill] sm:$0xff] }
 0x1c5   : > { %v3447_v58 = vadd.f32 %v1455_v25, %v1419_v55  ;;  %v3449_v16 = vmul.f32 %v1485_v24, %v1468_v63  ;;  %v1095_v15 = vmul.f32 %v1085_v1, %v3280_v57  ;;  %v3454_v60 = vadd.f32 %v1017_v35, %v981_v22  ;;  %v3785_v55 = vld [vmem:[#allocation22_spill] sm:$0xff] }
 0x1c6   : > { %v1072_v19 = vpop.permute.xlu1 %1071  ;;  %v3452_v4 = vadd.f32 %v1416_v32, %v1380_v40  ;;  %v1059_v52 = vadd.f32 %v1055_v61, %v1019_v43  ;;  %v1135_v31 = vmul.f32 %v1125_v21, %v3319_v20  ;;  %v940_v46 = vmul.f32 %v933_v42, %v3253_v47  ;;  %v3789_v42 = vld [vmem:[#allocation35_spill] sm:$0xff] }
 0x1c7   : > { %v969_v17 = vrot.slane %v3395_v11, %v3303_v12  ;;  %v1009_v24 = vrot.slane %v3395_v11, %v3315_v18  ;;  %v1049_v63 = vrot.slane %v3395_v11, %v3321_v23  ;;  %v3464_v6 = vmul.f32 %v1165_v27, %v1148_v7  ;;  %v3787_v27 = vld [vmem:[#allocation23_spill] sm:$0xff] }
 0x1c8   : > { %v1099_v57 = vadd.f32 %v1095_v15, %v1059_v52  ;;  %v1089_v32 = vrot.slane %v3395_v11, %v3326_v28  ;;  %v1298_v20 = vadd.f32 %v3372_v9, %v3362_v8  ;;  %v3774_v37 = vrot.slane %v3324_v26, %v3321_v23  ;;  %v3790_v15 = vld [vmem:[#allocation24_spill] sm:$0xff] }
 0x1c9   : > { %v976_v47 = vmul.f32 %v969_v17, %v3257_v48  ;;  %v1016_v36 = vmul.f32 %v1009_v24, %v3274_v53  ;;  %v1056_v25 = vmul.f32 %v1049_v63, %v3305_v13  ;;  %v3776_v8 = vrot.slane %v3324_v26, %v3326_v28  ;;  %v3777_v53 = vld [vmem:[#allocation34_spill] sm:$0xff] }
 0x1ca   : > { %v1374_v62 = vmul.f32 %v3774_v37, %v3216_v59  ;;  %v3477_v14 = vadd.f32 %v1135_v31, %v1099_v57  ;;  %v1096_v33 = vmul.f32 %v1089_v32, %v1072_v19  ;;  %v1338_v44 = vadd.f32 %v3375_v10, %v1298_v20  ;;  %v3792_v57 = vld [vmem:[#allocation25_spill] sm:$0xff] }
 0x1cb   : > { %v1414_v9 = vmul.f32 %v3776_v8, %v3775_v34  ;;  %v1356_v48 = vpop.permute.xlu1 %1355  ;;  %v980_v39 = vadd.f32 %v976_v47, %v940_v46  ;;  %v3778_v13 = vrot.slane %v3324_v26, %v3332_v30  ;;  %v1521_v59 = vrot.slane %v3324_v26, %v3779_v51  ;;  %v3794_v8 = vld [vmem:[#allocation31_spill] sm:$0xff] }
 0x1cc   : > { %v3782_v61 = vrot.slane %v3781_v41, %v3296_v0  ;;  %v1378_v5 = vadd.f32 %v1374_v62, %v1338_v44  ;;  %v3784_v35 = vrot.slane %v3324_v26, %v3328_v29  ;;  %v3786_v1 = vrot.slane %v3781_v41, %v3303_v12  ;;  %v3793_v44 = vld [vmem:[#allocation27_spill] sm:$0xff] }
 0x1cd   : > { %v1454_v45 = vmul.f32 %v3778_v13, %v3777_v53  ;;  %v3788_v40 = vrot.slane %v3781_v41, %v3315_v18  ;;  %v1020_v43 = vadd.f32 %v1016_v36, %v980_v39  ;;  %v1534_v7 = vmul.f32 %v1521_v59, %v3789_v42  ;;  %v1152_v39 = vpop.permute.xlu0 %1151  ;;  %v3795_v13 = vld [vmem:[#allocation28_spill] sm:$0xff] }
 0x1ce   : > { %v938_v10 = vmul.f32 %v3782_v61, %v3780_v38  ;;  %v1494_v50 = vmul.f32 %v3784_v35, %v3783_v3  ;;  %v974_v21 = vmul.f32 %v3786_v1, %v3785_v55  ;;  %v3791_v19 = vrot.slane %v3781_v41, %v3321_v23 }
 0x1cf   : > { %v1014_v22 = vmul.f32 %v3788_v40, %v3787_v27  ;;  %v1081_v26 = vrot.slane %v3781_v41, %v3326_v28  ;;  %v1418_v31 = vadd.f32 %v1414_v9, %v1378_v5  ;;  %v1121_v17 = vrot.slane %v3781_v41, %v3332_v30  ;;  %v3797_v27 = vld [vmem:[#allocation26_spill] sm:$0xff] }
 0x1d0   : > { %v1054_v52 = vmul.f32 %v3791_v19, %v3790_v15  ;;  %v978_v46 = vadd.f32 %v974_v21, %v938_v10  ;;  %v1161_v24 = vrot.slane %v3781_v41, %v3328_v29  ;;  %v1060_v63 = vadd.f32 %v1056_v25, %v1020_v43  ;;  %v1508_v36 = vpop.permute.xlu1 %1507  ;;  %v3796_v25 = vld [vmem:[#allocation39_spill] sm:$0xff]  ;;  %v3799_v15 = vld [vmem:[#allocation42_spill] sm:$0xff] }
 0x1d1   : > { %v1094_v32 = vmul.f32 %v1081_v26, %v3792_v57  ;;  %v1201_v20 = vrot.slane %v3781_v41, %v3779_v51  ;;  %v1129_v47 = vrot.slane %v3395_v11, %v3332_v30  ;;  %v1458_v37 = vadd.f32 %v1454_v45, %v1418_v31  ;;  %v3800_v26 = vld [vmem:[#allocation41_spill] sm:$0xff] }
 0x1d2   : > { %v1018_v62 = vadd.f32 %v1014_v22, %v978_v46  ;;  %v1134_v34 = vmul.f32 %v1121_v17, %v3793_v44  ;;  %v1174_v9 = vmul.f32 %v1161_v24, %v3794_v8  ;;  %v1100_v53 = vadd.f32 %v1096_v33, %v1060_v63 }
 0x1d3   : > { %v1214_v59 = vmul.f32 %v1201_v20, %v3795_v13  ;;  %v1136_v38 = vmul.f32 %v1129_v47, %v3796_v25  ;;  %v1169_v61 = vrot.slane %v3395_v11, %v3328_v29  ;;  %v1498_v41 = vadd.f32 %v1494_v50, %v1458_v37  ;;  %v3798_v50 = vld [vmem:[#allocation32_spill] sm:$0xff] }
 0x1d4   : > { %v1058_v10 = vadd.f32 %v1054_v52, %v1018_v62  ;;  %v1257_v5 = vrot.slane %v3445_v56, %v3296_v0  ;;  %v1293_v45 = vrot.slane %v3445_v56, %v3303_v12  ;;  %v1333_v33 = vrot.slane %v3445_v56, %v3315_v18 }
 0x1d5   : > { %v1140_v3 = vadd.f32 %v1136_v38, %v1100_v53  ;;  %v1176_v35 = vmul.f32 %v1169_v61, %v1152_v39  ;;  %v1373_v55 = vrot.slane %v3445_v56, %v3321_v23  ;;  %v1538_v1 = vadd.f32 %v1534_v7, %v1498_v41  ;;  %v1036_v43 = vpop.permute.xlu1 %1035 }
 0x1d6   : > { %v1098_v21 = vadd.f32 %v1094_v32, %v1058_v10  ;;  %v1261_v40 = vmul.f32 %v1257_v5, %v3797_v27  ;;  %v1297_v22 = vmul.f32 %v1293_v45, %v3798_v50  ;;  %v1337_v19 = vmul.f32 %v1333_v33, %v3799_v15  ;;  %v1156_v5 = vpop.permute.xlu0 %1155  ;;  %v3803_v33 = vld [vmem:[#allocation43_spill] sm:$0xff] }
 0x1d7   : > { %v3538_v42 = vadd.f32 %v1176_v35, %v1140_v3  ;;  %v1377_v52 = vmul.f32 %v1373_v55, %v1356_v48  ;;  %v1525_v31 = vrot.slane %v3800_v26, %v3779_v51  ;;  %1606 = vmatprep.mubr.f32.mxu1 %v1538_v1  ;;  %1695 = vmatprep.mubr.f32.mxu0 %v1538_v1 }
 0x1d8   : > { %v1138_v46 = vadd.f32 %v1134_v34, %v1098_v21  ;;  %v1301_v17 = vadd.f32 %v1297_v22, %v1261_v40  ;;  %v1053_v7 = vrot.slane %v3417_v54, %v3321_v23  ;;  %v1499_v24 = vadd.f32 %v3449_v16, %v3447_v58  ;;  %v3801_v34 = vld [vmem:[#allocation37_spill] sm:$0xff] }
 0x1d9   : > { %v1535_v63 = vmul.f32 %v1525_v31, %v1508_v36  ;;  %v1205_v57 = vrot.slane %v3348_v2, %v3779_v51  ;;  %v1449_v48 = vrot.slane %v3398_v49, %v3332_v30  ;;  %v1179_v37 = vadd.f32 %v3464_v6, %v3477_v14  ;;  %v3802_v14 = vld [vmem:[#allocation33_spill] sm:$0xff] }
 0x1da   : > { %v1178_v32 = vadd.f32 %v1174_v9, %v1138_v46  ;;  %v1341_v20 = vadd.f32 %v1337_v19, %v1301_v17  ;;  %v1057_v47 = vmul.f32 %v1053_v7, %v1036_v43  ;;  %v1188_v44 = vpop.permute.xlu1 %1187  ;;  %v1489_v36 = vrot.slane %v3398_v49, %v3328_v29 }
 0x1db   : > { %v1539_v62 = vadd.f32 %v1535_v63, %v1499_v24  ;;  %v1456_v8 = vmul.f32 %v1449_v48, %v3801_v34  ;;  %v1215_v16 = vmul.f32 %v1205_v57, %v1188_v44  ;;  %v1413_v9 = vrot.slane %v3445_v56, %v3326_v28  ;;  %v3804_v34 = vld [vmem:[#allocation36_spill] sm:$0xff] }
 0x1dc   : > { %v1218_v39 = vadd.f32 %v1214_v59, %v1178_v32  ;;  %v1381_v53 = vadd.f32 %v1377_v52, %v1341_v20  ;;  %v1061_v58 = vadd.f32 %v1057_v47, %v3454_v60  ;;  %v1133_v61 = vrot.slane %v3417_v54, %v3332_v30 }
 0x1dd   : > { %v1460_v2 = vadd.f32 %v1456_v8, %v3452_v4  ;;  %v1219_v6 = vadd.f32 %v1215_v16, %v1179_v37  ;;  %v1417_v13 = vmul.f32 %v1413_v9, %v3802_v14  ;;  %v1093_v4 = vrot.slane %v3417_v54, %v3326_v28 }
 0x1de   : > { %1607 = vmatmul.mubr.f32.vlgmr.msra.gmra.mrb[0].mxu1 %v1218_v39  ;;  %1696 = vmatmul.mubr.f32.vlgmr.msra.gmra.mrb[12].mxu0 %v1218_v39  ;;  %v1173_v41 = vrot.slane %v3417_v54, %v3328_v29  ;;  %v1453_v3 = vrot.slane %v3445_v56, %v3332_v30  ;;  %v1137_v55 = vmul.f32 %v1133_v61, %v3803_v33 }
 0x1df   : > { %1612 = vmatprep.mubr.f32.mxu1 %v1539_v62  ;;  %1700 = vmatprep.mubr.f32.mxu0 %v1539_v62  ;;  %v1472_v59 = vpop.permute.xlu1 %1471  ;;  %v1421_v38 = vadd.f32 %v1417_v13, %v1381_v53  ;;  %v1529_v22 = vrot.slane %v3398_v49, %v3779_v51  ;;  %v1209_v26 = vrot.slane %v3395_v11, %v3779_v51 }
 0x1e0   : > { %v1496_v25 = vmul.f32 %v1489_v36, %v1472_v59  ;;  %v1177_v1 = vmul.f32 %v1173_v41, %v1156_v5  ;;  %v1493_v17 = vrot.slane %v3445_v56, %v3328_v29  ;;  %v1533_v63 = vrot.slane %v3445_v56, %v3779_v51  ;;  %v610_v56 = vld [vmem:[%s3694_s6] sm:$0x7] }
 0x1e1   : > { %v1213_v20 = vrot.slane %v3417_v54, %v3779_v51  ;;  %v596_v8 = vrot.slane %v3804_v34, %v3315_v18  ;;  %v615_v54 = vrot.slane %v610_v56, %v3296_v0  ;;  %v600_v16 = vrot.slane %v3804_v34, %v3321_v23 }
 0x1e2   : > { %1613 = vmatmul.mubr.f32.gmra.mrb[2].mxu1 %v1219_v6  ;;  %1701 = vmatmul.mubr.f32.gmra.mrb[14].mxu0 %v1219_v6  ;;  %v1500_v60 = vadd.f32 %v1496_v25, %v1460_v2  ;;  %v619_v2 = vrot.slane %v610_v56, %v3303_v12  ;;  %v3606_v33 = vrot.slane %v3804_v34, %v3326_v28 }
 0x1e3   : > { %v3593_v51 = vadd.f32 %v615_v54, %v596_v8  ;;  %v2486_v54 = vld [vmem:[%s3047_s18] sm:$0xff] }
 0x1e4   : > { %v1076_v10 = vpop.permute.xlu1 %1075  ;;  %v3599_v25 = vadd.f32 %v619_v2, %v600_v16 }
 0x1e5   : > { %v1097_v45 = vmul.f32 %v1093_v4, %v1076_v10 }
 0x1e7   : > { %v1101_v35 = vadd.f32 %v1097_v45, %v1061_v58 }
 0x1e9   : > { %v1141_v21 = vadd.f32 %v1137_v55, %v1101_v35  ;;  %v1436_v27 = vpop.permute.xlu1 %1435 }
 0x1ea   : > { %v1457_v40 = vmul.f32 %v1453_v3, %v1436_v27 }
 0x1eb   : > { %v1181_v50 = vadd.f32 %v1177_v1, %v1141_v21  ;;  %v3610_v1 = vrot.slane %v610_v56, %v3315_v18 }
 0x1ec   : > { %v1461_v43 = vadd.f32 %v1457_v40, %v1421_v38 }
 0x1ee   : > { %v1512_v15 = vpop.permute.xlu1 %1511 }
 0x1ef   : > { %v1536_v19 = vmul.f32 %v1529_v22, %v1512_v15 }
 0x1f1   : > { %v1540_v52 = vadd.f32 %v1536_v19, %v1500_v60 }
 0x1f2   : > { %v1192_v31 = vpop.permute.xlu1 %1191 }
 0x1f3   : > { %v1216_v30 = vmul.f32 %v1209_v26, %v1192_v31  ;;  %1618 = vmatprep.mubr.f32.mxu1 %v1540_v52  ;;  %1705 = vmatprep.mubr.f32.mxu0 %v1540_v52 }
 0x1f5   : > { %v1220_v46 = vadd.f32 %v1216_v30, %v3538_v42 }
 0x1f7   : > { %v1476_v7 = vpop.permute.xlu1 %1475  ;;  %1619 = vmatmul.mubr.f32.gmra.mrb[4].mxu1 %v1220_v46  ;;  %1706 = vmatmul.mubr.f32.gmra.mrb[16].mxu0 %v1220_v46 }
 0x1f8   : > { %v1497_v49 = vmul.f32 %v1493_v17, %v1476_v7  ;;  %v3579_v11 = vpop.f32.mrb[8].mxu0 }
 0x1f9   : > { %v883_v42 = vpop.f32.mrb[9].mxu0  ;;  %v889_v30 = vadd.f32 %v3579_v11, %v3606_v33 }
 0x1fa   : > { %v1501_v24 = vadd.f32 %v1497_v49, %v1461_v43  ;;  %v884_v55 = vadd.f32 %v883_v42, %v3606_v33 }
 0x1fc   : > { %v1516_v57 = vpop.permute.xlu1 %1515  ;;  %v3583_v29 = vpop.f32.mrb[10].mxu0 }
 0x1fd   : > { %v1537_v48 = vmul.f32 %v1533_v63, %v1516_v57  ;;  %v3585_v44 = vpop.f32.mrb[11].mxu0 }
 0x1ff   : > { %v1541_v32 = vadd.f32 %v1537_v48, %v1501_v24 }
 0x200   : > { %v1196_v47 = vpop.permute.xlu1 %1195 }
 0x201   : > { %v1217_v37 = vmul.f32 %v1213_v20, %v1196_v47  ;;  %1624 = vmatprep.mubr.f32.mxu1 %v1541_v32  ;;  %1710 = vmatprep.mubr.f32.mxu0 %v1541_v32 }
 0x203   : > { %v1221_v62 = vadd.f32 %v1217_v37, %v1181_v50 }
 0x205   : > { %1625 = vmatmul.mubr.f32.gmra.mrb[6].mxu1 %v1221_v62  ;;  %1711 = vmatmul.mubr.f32.gmra.mrb[18].mxu0 %v1221_v62 }
 0x2b1   : > { %v1608_v39 = vpop.f32.mrb[0].mxu1  ;;  %v2039_v53 = vpop.f32.mrb[12].mxu0 }
 0x2b2   : > { %v2282_v58 = vadd.f32 %v3593_v51, %v1608_v39  ;;  %v1610_v36 = vpop.f32.mrb[1].mxu1  ;;  %v2040_v9 = vpop.f32.mrb[13].mxu0 }
 0x2b3   : > { %v2041_v6 = vadd.f32 %v2040_v9, %v2039_v53  ;;  %v2284_v41 = vadd.f32 %v3599_v25, %v1610_v36  ;;  %v2487_v36 = vld [vmem:[%s3047_s18 + $0x8] sm:$0xff] }
 0x2b4   : > { %v1970_v14 = vmul.f32 -1.442695, %v2282_v58 }
 0x2b5   : > { %v1614_v13 = vpop.f32.mrb[2].mxu1  ;;  %v2042_v59 = vpop.f32.mrb[14].mxu0  ;;  %v1971_v23 = vmul.f32 -1.442695, %v2284_v41  ;;  %v1698_v52 = vadd.f32 %v2041_v6, %v3610_v1 }
 0x2b6   : > { %2446 = vpow2.f32 %v1970_v14  ;;  %v2286_v0 = vadd.f32 %v3593_v51, %v1614_v13  ;;  %v1616_v38 = vpop.f32.mrb[3].mxu1  ;;  %v2043_v4 = vpop.f32.mrb[15].mxu0 }
 0x2b7   : > { %v2044_v60 = vadd.f32 %v2043_v4, %v2042_v59  ;;  %v2288_v12 = vadd.f32 %v3599_v25, %v1616_v38 }
 0x2b8   : > { %v1972_v61 = vmul.f32 -1.442695, %v2286_v0  ;;  %v894_v0 = vadd.f32 %v3585_v44, %v3606_v33  ;;  %v899_v44 = vadd.f32 %v3583_v29, %v3606_v33  ;;  %v2489_v33 = vld [vmem:[%s3047_s18 + $0x18] sm:$0xff] }
 0x2b9   : > { %v1973_v45 = vmul.f32 -1.442695, %v2288_v12  ;;  %v1703_v7 = vadd.f32 %v2044_v60, %v3610_v1 }
 0x2ba   : > { %2448 = vpow2.f32 %v1972_v61 }
 0x2bb   : > { %2450 = vpow2.f32 %v1971_v23 }
 0x2c0   : > { %v2447_v10 = vpop.eup %2446 }
 0x2c1   : > { %v1748_v5 = vadd.f32 1.0, %v2447_v10 }
 0x2c3   : > { %2452 = vrcp.f32 %v1748_v5 }
 0x2c4   : > { %v2449_v3 = vpop.eup %2448  ;;  %2454 = vpow2.f32 %v1973_v45 }
 0x2c5   : > { %v1750_v35 = vadd.f32 1.0, %v2449_v3  ;;  %v2451_v40 = vpop.eup %2450  ;;  %v2488_v3 = vld [vmem:[%s3047_s18 + $0x10] sm:$0xff] }
 0x2c6   : > { %v1749_v46 = vadd.f32 1.0, %v2451_v40 }
 0x2c7   : > { %2456 = vrcp.f32 %v1750_v35 }
 0x2ca   : > { %v1620_v21 = vpop.f32.mrb[4].mxu1  ;;  %v2045_v27 = vpop.f32.mrb[16].mxu0 }
 0x2cb   : > { %v2290_v50 = vadd.f32 %v3593_v51, %v1620_v21  ;;  %v1622_v22 = vpop.f32.mrb[5].mxu1  ;;  %v2046_v43 = vpop.f32.mrb[17].mxu0 }
 0x2cc   : > { %v2047_v19 = vadd.f32 %v2046_v43, %v2045_v27  ;;  %v2292_v57 = vadd.f32 %v3599_v25, %v1622_v22 }
 0x2cd   : > { %v2453_v15 = vpop.eup %2452  ;;  %v1974_v26 = vmul.f32 -1.442695, %v2290_v50 }
 0x2ce   : > { %v1772_v28 = vmul.f32 %v2453_v15, %v884_v55  ;;  %v2455_v31 = vpop.eup %2454  ;;  %v1975_v48 = vmul.f32 -1.442695, %v2292_v57  ;;  %v1708_v60 = vadd.f32 %v2047_v19, %v3610_v1 }
 0x2cf   : > { %2458 = vpow2.f32 %v1974_v26  ;;  %v1751_v24 = vadd.f32 1.0, %v2455_v31 }
 0x2d0   : > { %v1776_v18 = vadd.f32 %v1772_v28, %v1698_v52 }
 0x2d1   : > { %v2457_v17 = vpop.eup %2456 }
 0x2d2   : > { %2460 = vtanh.f32 %v1776_v18  ;;  %v1773_v49 = vmul.f32 %v2457_v17, %v889_v30 }
 0x2d3   : > { %2462 = vrcp.f32 %v1749_v46 }
 0x2d4   : > { %v1777_v63 = vadd.f32 %v1773_v49, %v1703_v7 }
 0x2d6   : > { %2464 = vtanh.f32 %v1777_v63 }
 0x2d7   : > { %2466 = vrcp.f32 %v1751_v24 }
 0x2d8   : > { %v1626_v32 = vpop.f32.mrb[6].mxu1  ;;  %v2048_v20 = vpop.f32.mrb[18].mxu0  ;;  %2468 = vpow2.f32 %v1975_v48 }
 0x2d9   : > { %v2459_v11 = vpop.eup %2458  ;;  %v2294_v42 = vadd.f32 %v3593_v51, %v1626_v32  ;;  %v1628_v47 = vpop.f32.mrb[7].mxu1 }
 0x2da   : > { %v2049_v37 = vpop.f32.mrb[19].mxu0  ;;  %v1752_v62 = vadd.f32 1.0, %v2459_v11  ;;  %v2296_v14 = vadd.f32 %v3599_v25, %v1628_v47 }
 0x2db   : > { %v2050_v56 = vadd.f32 %v2049_v37, %v2048_v20  ;;  %v1976_v8 = vmul.f32 -1.442695, %v2294_v42 }
 0x2dc   : > { %v2461_v34 = vpop.eup %2460  ;;  %2470 = vrcp.f32 %v1752_v62  ;;  %v1977_v4 = vmul.f32 -1.442695, %v2296_v14 }
 0x2dd   : > { %v1784_v39 = vsub.f32 %v2461_v34, %v2486_v54  ;;  %v2463_v53 = vpop.eup %2462  ;;  %2472 = vpow2.f32 %v1976_v8  ;;  %v1713_v21 = vadd.f32 %v2050_v56, %v3610_v1 }
 0x2de   : > { %2474 = vpow2.f32 %v1977_v4 }
 0x2df   : > { %v1788_v58 = vmul.f32 %v2463_v53, %v1784_v39 }
 0x2e0   : > { %v2465_v16 = vpop.eup %2464 }
 0x2e1   : > { %v1792_v2 = vadd.f32 %v2486_v54, %v1788_v58  ;;  %v1785_v9 = vsub.f32 %v2465_v16, %v2487_v36  ;;  %v2467_v51 = vpop.eup %2466 }
 0x2e2   : > { %v2469_v59 = vpop.eup %2468 }
 0x2e3   : > { %v1789_v6 = vmul.f32 %v2467_v51, %v1785_v9  ;;  %1796 = vst [vmem:[%s3623_s17] sm:$0xff] %v1792_v2  ;;  %v1753_v23 = vadd.f32 1.0, %v2469_v59 }
 0x2e5   : > { %v1793_v13 = vadd.f32 %v2487_v36, %v1789_v6 }
 0x2e6   : > { %v2471_v38 = vpop.eup %2470 }
 0x2e7   : > { %1797 = vst [vmem:[%s3623_s17 + $0x8] sm:$0xff] %v1793_v13  ;;  %v1774_v61 = vmul.f32 %v2471_v38, %v894_v0  ;;  %v2473_v41 = vpop.eup %2472 }
 0x2e8   : > { %v1754_v12 = vadd.f32 1.0, %v2473_v41  ;;  %v2475_v10 = vpop.eup %2474 }
 0x2e9   : > { %v1778_v25 = vadd.f32 %v1774_v61, %v1708_v60  ;;  %v1755_v50 = vadd.f32 1.0, %v2475_v10 }
 0x2eb   : > { %2476 = vtanh.f32 %v1778_v25 }
 0x2ec   : > { %2478 = vrcp.f32 %v1754_v12 }
 0x2ed   : > { %2480 = vrcp.f32 %v1753_v23 }
 0x2f5   : > { %v2477_v5 = vpop.eup %2476 }
 0x2f6   : > { %v2479_v45 = vpop.eup %2478  ;;  %v1786_v35 = vsub.f32 %v2477_v5, %v2488_v3 }
 0x2f7   : > { %v2481_v55 = vpop.eup %2480  ;;  %v1775_v27 = vmul.f32 %v2479_v45, %v899_v44 }
 0x2f8   : > { %v1790_v40 = vmul.f32 %v2481_v55, %v1786_v35 }
 0x2f9   : > { %v1779_v22 = vadd.f32 %v1775_v27, %v1713_v21 }
 0x2fa   : > { %v1794_v43 = vadd.f32 %v2488_v3, %v1790_v40 }
 0x2fb   : > { %2482 = vtanh.f32 %v1779_v22 }
 0x2fc   : > { %1798 = vst [vmem:[%s3623_s17 + $0x10] sm:$0xff] %v1794_v43  ;;  %2484 = vrcp.f32 %v1755_v50 }
 0x305   : > { %v2483_v29 = vpop.eup %2482 }
 0x306   : > { %v1787_v15 = vsub.f32 %v2483_v29, %v2489_v33  ;;  %v2485_v19 = vpop.eup %2484 }
 0x308   : > { %v1791_v52 = vmul.f32 %v2485_v19, %v1787_v15 }
 0x30a   : > { %v1795_v1 = vadd.f32 %v2489_v33, %v1791_v52 }
 0x30c   : > { %1799 = vst [vmem:[%s3623_s17 + $0x18] sm:$0xff] %v1795_v1 }
 0x30d   : > { %2649 = shalt.err (!%p2646_p1)
}
 0x30e   : > { %s2650_s19 = scalar_lea.hbm %s3641_s20, 512  ;;  %s2654_s11 = scalar_lea.hbm %s3695_s7, 1024 }
 0x30f   : > { %p2651_p0 = scmp.ne.s32.totalorder %s3641_s20, %s2650_s19  ;;  %p2655_p4 = scmp.lt.u32.totalorder %s3641_s20, %s3695_s7 }
 0x310   : > { %p2656_p13 = scmp.lt.u32.totalorder %s2654_s11, %s2650_s19  ;;  %p2658_p3 = scmp.lt.u32.totalorder %s2650_s19, %s3641_s20 }
 0x311   : > { %p2652_p5 = pnand %p2651_p0, %p3805_p7 }
 0x312   : > { %p2657_p12 = por %p2656_p13, %p2655_p4 }
 0x313   : > { %p2653_p11 = pneg %p2652_p5 }
 0x314   : > { %p2659_p2 = por %p2658_p3, %p2657_p12 }
 0x316   : > { %p2660_p6 = pnand %p2659_p2, %p2653_p11 }
 0x318   : > { %2663 = shalt.err (!%p2660_p6)
}
 0x319   : > { %s2733_s12 = smov 128   ;;  %s2734_s24 = smov 8  }
 0x31a   : > { %2319 = dma.vmem_to_hbm [thread:$0]  (%p3805_p7), %s3643_s29, 512, %s3641_s20, %s1801_s9, %s2733_s12, %s2733_s12, %s2734_s24  }
 0x31b PF: > { %s3806_s14 = sld [smem:[#allocation16_spill]]  ;;  %s3807_s21 = sld [smem:[#allocation20_spill]] }
 0x31c   : > { %s3808_s17 = sld [smem:[#allocation17_spill]] }
 0x321   : > { %s1829_s22 = sand.u32 1, %s3806_s14   ;;  %p3809_p8 = scmp.ne.s32.totalorder %s3807_s21, 0 }
 0x322   : > { %p3810_p9 = scmp.ge.s32.totalorder %s3808_s17, 2  ;;  %s1830_s3 = scalar_lea.sflag [#allocation4], %s1829_s22 }
 0x324   : > { %p2339_p10 = pnand %p3810_p9, %p3809_p8 }
 0x326   : > { %2693 = dma.done.wait (!%p2339_p10), %s1830_s3, 512  }
 0x327   : > { %2695 = vsyncadd (!%p2339_p10), %s1830_s3, 4294966784  ;;  %s3811_s27 = sld [smem:[#allocation18_spill]]  ;;  %s3812_s8 = sld [smem:[#allocation19_spill]] }
 0x328   : > { %s3813_s24 = smov %s2702_s25  ;;  %s3814_s25 = smov %s2706_s26 }
 0x32d   : > { %p24_p1 = scmp.ge.s32.totalorder %s3811_s27, 4   ;;  %s3815_s26 = smov %s3812_s8 }
 0x32f   :  { %26 = sbr.rel (!%p24_p1) target bundleno = 11 (0xb), region = 125 }
 0x336   :  { %1835 = vsyncpa [#allocation3], 1 }
 0x337   :  { %1837 = vsyncpa [#allocation3 + $0x1], 1 }
 0x338   :  { %1838 = vsyncpa [#allocation6], 1 }
 0x339   :  { %1840 = vsyncpa [#allocation6 + $0x1], 1 }
 0x33a   :  { %1841 = vsyncpa [#allocation9], 1 }
 0x33b   :  { %1842 = vsyncpa [#allocation4], 1 }
 0x33c   :  { %1844 = vsyncpa [#allocation4 + $0x1], 1 }

</bundles_post_ra>
